<compile_context>
chip_gen: v7x
topology: tpu7x:2x2x1
jax: 0.10.0
libtpu: 0.0.40
codegen_flags: <defaults>
</compile_context>

<pallas_src>
import numpy as np
import jax
import jax.numpy as jnp
from jax.experimental import pallas as pl
from jax.experimental.pallas import tpu as pltpu

KERNEL_SIZE = 11                 # torchmetrics SSIM default gaussian window
SIGMA = 1.5                      # torchmetrics SSIM default sigma
PAD = (KERNEL_SIZE - 1) // 2
_C1 = (0.01 * 1.0) ** 2          # k1=0.01, data_range=1.0
_C2 = (0.03 * 1.0) ** 2          # k2=0.03, data_range=1.0


def _gaussian_1d() -> np.ndarray:
    dist = np.arange((1 - KERNEL_SIZE) / 2.0, (1 + KERNEL_SIZE) / 2.0, 1.0, dtype=np.float64)
    g = np.exp(-0.5 * (dist / SIGMA) ** 2)
    return (g / g.sum()).astype(np.float32)


# Compile-time gaussian taps for the height pass (VPU FMAs, no band matrix in HBM).
_G_TAPS = tuple(float(v) for v in _gaussian_1d())


def _valid_conv_matrix(n_in: int) -> np.ndarray:
    """Banded (n_in, n_in - 2*PAD) matrix M with (x @ M)[j] = sum_t g[t] * x[j + t].

    torchmetrics' reflect-pad + VALID conv + interior crop never touches the
    reflected border, so it equals a VALID conv on the unpadded signal.
    """
    g = _gaussian_1d()
    n_out = n_in - 2 * PAD
    m = np.zeros((n_in, n_out), np.float32)
    for j in range(n_out):
        m[j:j + KERNEL_SIZE, j] = g
    return m


def _ssim_block_kernel(x_ref, y_ref, mw_ref, out_ref):
    x = x_ref[...]                       # (TN, H, W) f32 : block of B*C images
    y = y_ref[...]
    mw = mw_ref[...]                     # (W, Wi) gaussian band matrix (width pass)

    tn, h, w = x.shape
    wi = mw.shape[1]
    hi = h - 2 * PAD

    # Fuse all five blur inputs into one LHS so the weight matrix is loaded into the
    # MXU once per grid step and M is 5x larger (review item: fused blurs).
    s = jnp.concatenate([x, y, x * x, y * y, x * y], axis=0)       # (5*TN, H, W)

    # Width pass: single large 2-D MXU matmul, M = 5*TN*H, K = W, N = Wi.
    # TODO(synk): for very large W (>~512) tile this into block-banded column chunks
    # (or lane rolls) instead of the dense O(W)-MACs-per-output band matmul.
    t = jnp.dot(s.reshape(5 * tn * h, w), mw,
                preferred_element_type=jnp.float32)                # (5*TN*H, Wi)
    t = t.reshape(5 * tn, h, wi)

    # Height pass: 11-tap VALID gaussian as shifted sublane slices + VPU FMAs.
    # 11 useful MACs/output (vs O(H) for a dense band matmul) and it stays off the
    # MXU, replacing the old per-image batched tiny matmuls + mht broadcast.
    r = _G_TAPS[0] * t[:, 0:hi, :]
    for k in range(1, KERNEL_SIZE):
        r = r + _G_TAPS[k] * t[:, k:k + hi, :]                     # (5*TN, Hi, Wi)

    # Split the fused stack back into the five blurred statistics (leading-dim slices).
    mu_x = r[0 * tn:1 * tn]
    mu_y = r[1 * tn:2 * tn]
    e_xx = r[2 * tn:3 * tn]
    e_yy = r[3 * tn:4 * tn]
    e_xy = r[4 * tn:5 * tn]

    mu_x2 = mu_x * mu_x
    mu_y2 = mu_y * mu_y
    mu_xy = mu_x * mu_y

    num = (2.0 * mu_xy + _C1) * (2.0 * (e_xy - mu_xy) + _C2)
    den = (mu_x2 + mu_y2 + _C1) * ((e_xx - mu_x2) + (e_yy - mu_y2) + _C2)
    # Divide on the otherwise-idle EUP slot.
    ssim_sum = jnp.sum(num * pl.reciprocal(den, approx=True))

    # Each grid step writes its own disjoint 128-lane block: no resident
    # accumulator, no read-modify-write -> the grid axis is truly parallel.
    out_ref[...] = jnp.broadcast_to(ssim_sum, out_ref.shape).astype(out_ref.dtype)


def ssim_loss(x: jax.Array, y: jax.Array) -> jax.Array:
    """1 - SSIM(x, y) with torchmetrics defaults (data_range=1.0)."""
    assert x.shape == y.shape and x.ndim == 4, "expected NCHW preds/target of equal shape"
    B, C, H, W = x.shape
    Hi, Wi = H - 2 * PAD, W - 2 * PAD
    assert Hi > 0 and Wi > 0, "spatial dims must be > kernel_size - 1 (>= 11)"

    N = B * C
    xr = x.astype(jnp.float32).reshape(N, H, W)
    yr = y.astype(jnp.float32).reshape(N, H, W)

    # Generation-aware VMEM budgeting: 128 MiB VMEM parts (v5e/v6e) get bigger
    # blocks / a higher scoped limit; 64 MiB parts (v7x) stay conservative.
    try:
        vmem_cap = int(pltpu.get_tpu_info().vmem_capacity_bytes)
    except Exception:
        vmem_cap = 64 * 1024 * 1024
    if vmem_cap >= 128 * 1024 * 1024:
        vmem_limit = 88 * 1024 * 1024
    else:
        vmem_limit = 44 * 1024 * 1024
    # Peak in-kernel footprint is roughly ~20-24x the (tn, H, W) input block
    # (double-buffered x/y, 5-way stacked blur input, width intermediate, height
    # output, SSIM temporaries); /32 leaves headroom for compiler scratch.
    block_budget = vmem_limit // 32

    # TODO(synk): very large single images (H*W*4 >> block_budget) would additionally
    # need a spatial grid axis over H with a PAD-row halo; not implemented here.
    bytes_per_image = H * W * 4
    tn = max(1, min(N, block_budget // max(1, bytes_per_image)))
    if N >= 2:
        # Guarantee >= 2 grid blocks so both v7x TensorCores get work under "parallel".
        tn = min(tn, pl.cdiv(N, 2))
    num_blocks = pl.cdiv(N, tn)
    n_pad = num_blocks * tn
    if n_pad != N:
        # Zero-padded images contribute exactly Hi*Wi each (SSIM(0,0) == 1 per pixel);
        # the wrapper subtracts that analytically below.
        xr = jnp.pad(xr, ((0, n_pad - N), (0, 0), (0, 0)))
        yr = jnp.pad(yr, ((0, n_pad - N), (0, 0), (0, 0)))

    # Width-pass banded gaussian conv matrix: single HBM copy, resident across steps.
    # (No height band matrix needed any more: taps are compile-time constants.)
    # TODO(synk): bf16 matmul operands would give another 2-3x MXU throughput but the
    # var/cov cancellation makes the 5e-3 reference tolerance marginal; kept f32.
    mw = jnp.asarray(_valid_conv_matrix(W))          # (W, Wi)

    grid_spec = pltpu.PrefetchScalarGridSpec(
        num_scalar_prefetch=0,
        grid=(num_blocks,),
        in_specs=[
            pl.BlockSpec((tn, H, W), lambda i: (i, 0, 0)),   # preds block of images
            pl.BlockSpec((tn, H, W), lambda i: (i, 0, 0)),   # target block of images
            pl.BlockSpec((W, Wi), lambda i: (0, 0)),         # width conv matrix (resident)
        ],
        out_specs=pl.BlockSpec((1, 128), lambda i: (0, i)),  # per-block partial sums
    )

    partial = pl.pallas_call(
        _ssim_block_kernel,
        out_shape=jax.ShapeDtypeStruct((1, num_blocks * 128), jnp.float32),
        grid_spec=grid_spec,
        compiler_params=pltpu.CompilerParams(
            dimension_semantics=("parallel",),
            vmem_limit_bytes=vmem_limit,
        ),
    )(xr, yr, mw)

    block_sums = partial.reshape(num_blocks, 128)[:, 0]
    ssim_sum = jnp.sum(block_sums) - jnp.float32((n_pad - N) * Hi * Wi)
    ssim_mean = ssim_sum / jnp.float32(N * Hi * Wi)
    return (1.0 - ssim_mean).astype(jnp.float32)


class SSIMLoss:
    """JAX/Pallas counterpart of the PyTorch SSIMLoss module: 1 - SSIM(x, y)."""

    def __call__(self, x, y):
        return ssim_loss(x, y)


def _ssim_loss_reference(x, y):
    """Pure-JAX reference following torchmetrics' _ssim_update exactly."""
    B, C, H, W = x.shape
    x = x.astype(jnp.float32)
    y = y.astype(jnp.float32)
    g = jnp.asarray(_gaussian_1d())
    kern = jnp.broadcast_to(jnp.outer(g, g), (C, 1, KERNEL_SIZE, KERNEL_SIZE))
    pad_cfg = ((0, 0), (0, 0), (PAD, PAD), (PAD, PAD))
    xp = jnp.pad(x, pad_cfg, mode='reflect')
    yp = jnp.pad(y, pad_cfg, mode='reflect')

    def conv(z):
        return jax.lax.conv_general_dilated(
            z, kern, window_strides=(1, 1), padding='VALID',
            dimension_numbers=('NCHW', 'OIHW', 'NCHW'),
            feature_group_count=C, precision=jax.lax.Precision.HIGHEST)

    stacked = jnp.concatenate([xp, yp, xp * xp, yp * yp, xp * yp], axis=0)
    mu_x, mu_y, e_xx, e_yy, e_xy = jnp.split(conv(stacked), 5, axis=0)
    mu_x2, mu_y2, mu_xy = mu_x * mu_x, mu_y * mu_y, mu_x * mu_y
    num = (2.0 * mu_xy + _C1) * (2.0 * (e_xy - mu_xy) + _C2)
    den = (mu_x2 + mu_y2 + _C1) * ((e_xx - mu_x2) + (e_yy - mu_y2) + _C2)
    ssim_map = (num / den)[..., PAD:-PAD, PAD:-PAD]
    return 1.0 - jnp.mean(ssim_map.reshape(B, -1).mean(-1))


if __name__ == "__main__":
    key = jax.random.PRNGKey(0)
    kx, ky = jax.random.split(key)
    # small NCHW inputs in [0, 1): batch=2, channels=4, spatial=16
    x = jax.random.uniform(kx, (2, 4, 16, 16), jnp.float32)
    y = jax.random.uniform(ky, (2, 4, 16, 16), jnp.float32)

    loss = SSIMLoss()(x, y)
    loss = jax.block_until_ready(loss)
    assert loss.shape == () and bool(jnp.isfinite(loss))

    ref = jax.block_until_ready(_ssim_loss_reference(x, y))
    assert abs(float(loss) - float(ref)) < 5e-3, (float(loss), float(ref))
    print("KERNEL_OK")
</pallas_src>

<mosaic_0001>
module attributes {stable_mosaic.version = 11 : i64} {
  func.func @_ssim_block_kernel(%arg0: i32, %arg1: memref<4x16x16xf32, #tpu.memory_space<vmem>>, %arg2: memref<4x16x16xf32, #tpu.memory_space<vmem>>, %arg3: memref<16x6xf32, #tpu.memory_space<vmem>>, %arg4: memref<1x128xf32, #tpu.memory_space<vmem>>) attributes {dimension_semantics = [#tpu.dimension_semantics<parallel>], iteration_bounds = array<i64: 2>, scalar_prefetch = 0 : i64, scratch_operands = 0 : i64, tpu.core_type = #tpu.core_type<tc>, window_params = [{transform_indices = @transform_0, window_bounds = array<i64: 4, 16, 16>}, {transform_indices = @transform_1, window_bounds = array<i64: 4, 16, 16>}, {pipeline_mode = #tpu.pipeline_mode<synchronous>, transform_indices = @transform_2, window_bounds = array<i64: 16, 6>}, {transform_indices = @transform_3, window_bounds = array<i64: 1, 128>}]} {
    %c0 = arith.constant 0 : index
    %c0_0 = arith.constant 0 : index
    %c0_1 = arith.constant 0 : index
    %0 = vector.load %arg1[%c0, %c0_0, %c0_1] : memref<4x16x16xf32, #tpu.memory_space<vmem>>, vector<4x16x16xf32>
    %c0_2 = arith.constant 0 : index
    %c0_3 = arith.constant 0 : index
    %c0_4 = arith.constant 0 : index
    %1 = vector.load %arg2[%c0_2, %c0_3, %c0_4] : memref<4x16x16xf32, #tpu.memory_space<vmem>>, vector<4x16x16xf32>
    %c0_5 = arith.constant 0 : index
    %c0_6 = arith.constant 0 : index
    %2 = vector.load %arg3[%c0_5, %c0_6] : memref<16x6xf32, #tpu.memory_space<vmem>>, vector<16x6xf32>
    %3 = arith.mulf %0, %0 : vector<4x16x16xf32>
    %4 = arith.mulf %1, %1 : vector<4x16x16xf32>
    %5 = arith.mulf %0, %1 : vector<4x16x16xf32>
    %6 = tpu.concatenate %0, %1, %3, %4, %5 in 0 : vector<4x16x16xf32>, vector<4x16x16xf32>, vector<4x16x16xf32>, vector<4x16x16xf32>, vector<4x16x16xf32> -> vector<20x16x16xf32>
    %7 = vector.shape_cast %6 : vector<20x16x16xf32> to vector<320x16xf32>
    %cst = arith.constant dense<0.000000e+00> : vector<320x6xf32>
    %8 = tpu.matmul %7, %2, %cst {dimension_numbers = #tpu.dot_dimension_numbers<[1], [0], [0], [1], [0, 0, 1, 1], [], []>} : vector<320x16xf32>, vector<16x6xf32>, vector<320x6xf32> -> vector<320x6xf32>
    %9 = vector.shape_cast %8 : vector<320x6xf32> to vector<20x16x6xf32>
    %10 = vector.extract_strided_slice %9 {offsets = [0, 0, 0], sizes = [20, 6, 6], strides = [1, 1, 1]} : vector<20x16x6xf32> to vector<20x6x6xf32>
    %cst_7 = arith.constant 0.00102838012 : f32
    %11 = vector.broadcast %cst_7 : f32 to vector<20x6x6xf32>
    %12 = arith.mulf %11, %10 : vector<20x6x6xf32>
    %13 = vector.extract_strided_slice %9 {offsets = [0, 1, 0], sizes = [20, 6, 6], strides = [1, 1, 1]} : vector<20x16x6xf32> to vector<20x6x6xf32>
    %cst_8 = arith.constant 0.00759875821 : f32
    %14 = vector.broadcast %cst_8 : f32 to vector<20x6x6xf32>
    %15 = arith.mulf %14, %13 : vector<20x6x6xf32>
    %16 = arith.addf %12, %15 : vector<20x6x6xf32>
    %17 = vector.extract_strided_slice %9 {offsets = [0, 2, 0], sizes = [20, 6, 6], strides = [1, 1, 1]} : vector<20x16x6xf32> to vector<20x6x6xf32>
    %cst_9 = arith.constant 0.0360007733 : f32
    %18 = vector.broadcast %cst_9 : f32 to vector<20x6x6xf32>
    %19 = arith.mulf %18, %17 : vector<20x6x6xf32>
    %20 = arith.addf %16, %19 : vector<20x6x6xf32>
    %21 = vector.extract_strided_slice %9 {offsets = [0, 3, 0], sizes = [20, 6, 6], strides = [1, 1, 1]} : vector<20x16x6xf32> to vector<20x6x6xf32>
    %cst_10 = arith.constant 0.109360687 : f32
    %22 = vector.broadcast %cst_10 : f32 to vector<20x6x6xf32>
    %23 = arith.mulf %22, %21 : vector<20x6x6xf32>
    %24 = arith.addf %20, %23 : vector<20x6x6xf32>
    %25 = vector.extract_strided_slice %9 {offsets = [0, 4, 0], sizes = [20, 6, 6], strides = [1, 1, 1]} : vector<20x16x6xf32> to vector<20x6x6xf32>
    %cst_11 = arith.constant 0.213005543 : f32
    %26 = vector.broadcast %cst_11 : f32 to vector<20x6x6xf32>
    %27 = arith.mulf %26, %25 : vector<20x6x6xf32>
    %28 = arith.addf %24, %27 : vector<20x6x6xf32>
    %29 = vector.extract_strided_slice %9 {offsets = [0, 5, 0], sizes = [20, 6, 6], strides = [1, 1, 1]} : vector<20x16x6xf32> to vector<20x6x6xf32>
    %cst_12 = arith.constant 0.266011715 : f32
    %30 = vector.broadcast %cst_12 : f32 to vector<20x6x6xf32>
    %31 = arith.mulf %30, %29 : vector<20x6x6xf32>
    %32 = arith.addf %28, %31 : vector<20x6x6xf32>
    %33 = vector.extract_strided_slice %9 {offsets = [0, 6, 0], sizes = [20, 6, 6], strides = [1, 1, 1]} : vector<20x16x6xf32> to vector<20x6x6xf32>
    %cst_13 = arith.constant 0.213005543 : f32
    %34 = vector.broadcast %cst_13 : f32 to vector<20x6x6xf32>
    %35 = arith.mulf %34, %33 : vector<20x6x6xf32>
    %36 = arith.addf %32, %35 : vector<20x6x6xf32>
    %37 = vector.extract_strided_slice %9 {offsets = [0, 7, 0], sizes = [20, 6, 6], strides = [1, 1, 1]} : vector<20x16x6xf32> to vector<20x6x6xf32>
    %cst_14 = arith.constant 0.109360687 : f32
    %38 = vector.broadcast %cst_14 : f32 to vector<20x6x6xf32>
    %39 = arith.mulf %38, %37 : vector<20x6x6xf32>
    %40 = arith.addf %36, %39 : vector<20x6x6xf32>
    %41 = vector.extract_strided_slice %9 {offsets = [0, 8, 0], sizes = [20, 6, 6], strides = [1, 1, 1]} : vector<20x16x6xf32> to vector<20x6x6xf32>
    %cst_15 = arith.constant 0.0360007733 : f32
    %42 = vector.broadcast %cst_15 : f32 to vector<20x6x6xf32>
    %43 = arith.mulf %42, %41 : vector<20x6x6xf32>
    %44 = arith.addf %40, %43 : vector<20x6x6xf32>
    %45 = vector.extract_strided_slice %9 {offsets = [0, 9, 0], sizes = [20, 6, 6], strides = [1, 1, 1]} : vector<20x16x6xf32> to vector<20x6x6xf32>
    %cst_16 = arith.constant 0.00759875821 : f32
    %46 = vector.broadcast %cst_16 : f32 to vector<20x6x6xf32>
    %47 = arith.mulf %46, %45 : vector<20x6x6xf32>
    %48 = arith.addf %44, %47 : vector<20x6x6xf32>
    %49 = vector.extract_strided_slice %9 {offsets = [0, 10, 0], sizes = [20, 6, 6], strides = [1, 1, 1]} : vector<20x16x6xf32> to vector<20x6x6xf32>
    %cst_17 = arith.constant 0.00102838012 : f32
    %50 = vector.broadcast %cst_17 : f32 to vector<20x6x6xf32>
    %51 = arith.mulf %50, %49 : vector<20x6x6xf32>
    %52 = arith.addf %48, %51 : vector<20x6x6xf32>
    %53 = vector.extract_strided_slice %52 {offsets = [0, 0, 0], sizes = [4, 6, 6], strides = [1, 1, 1]} : vector<20x6x6xf32> to vector<4x6x6xf32>
    %54 = vector.extract_strided_slice %52 {offsets = [4, 0, 0], sizes = [4, 6, 6], strides = [1, 1, 1]} : vector<20x6x6xf32> to vector<4x6x6xf32>
    %55 = vector.extract_strided_slice %52 {offsets = [8, 0, 0], sizes = [4, 6, 6], strides = [1, 1, 1]} : vector<20x6x6xf32> to vector<4x6x6xf32>
    %56 = vector.extract_strided_slice %52 {offsets = [12, 0, 0], sizes = [4, 6, 6], strides = [1, 1, 1]} : vector<20x6x6xf32> to vector<4x6x6xf32>
    %57 = vector.extract_strided_slice %52 {offsets = [16, 0, 0], sizes = [4, 6, 6], strides = [1, 1, 1]} : vector<20x6x6xf32> to vector<4x6x6xf32>
    %58 = arith.mulf %53, %53 : vector<4x6x6xf32>
    %59 = arith.mulf %54, %54 : vector<4x6x6xf32>
    %60 = arith.mulf %53, %54 : vector<4x6x6xf32>
    %cst_18 = arith.constant 2.000000e+00 : f32
    %61 = vector.broadcast %cst_18 : f32 to vector<4x6x6xf32>
    %62 = arith.mulf %61, %60 : vector<4x6x6xf32>
    %cst_19 = arith.constant 9.99999974E-5 : f32
    %63 = vector.broadcast %cst_19 : f32 to vector<4x6x6xf32>
    %64 = arith.addf %62, %63 : vector<4x6x6xf32>
    %65 = arith.subf %57, %60 : vector<4x6x6xf32>
    %cst_20 = arith.constant 2.000000e+00 : f32
    %66 = vector.broadcast %cst_20 : f32 to vector<4x6x6xf32>
    %67 = arith.mulf %66, %65 : vector<4x6x6xf32>
    %cst_21 = arith.constant 8.99999984E-4 : f32
    %68 = vector.broadcast %cst_21 : f32 to vector<4x6x6xf32>
    %69 = arith.addf %67, %68 : vector<4x6x6xf32>
    %70 = arith.mulf %64, %69 : vector<4x6x6xf32>
    %71 = arith.addf %58, %59 : vector<4x6x6xf32>
    %cst_22 = arith.constant 9.99999974E-5 : f32
    %72 = vector.broadcast %cst_22 : f32 to vector<4x6x6xf32>
    %73 = arith.addf %71, %72 : vector<4x6x6xf32>
    %74 = arith.subf %55, %58 : vector<4x6x6xf32>
    %75 = arith.subf %56, %59 : vector<4x6x6xf32>
    %76 = arith.addf %74, %75 : vector<4x6x6xf32>
    %cst_23 = arith.constant 8.99999984E-4 : f32
    %77 = vector.broadcast %cst_23 : f32 to vector<4x6x6xf32>
    %78 = arith.addf %76, %77 : vector<4x6x6xf32>
    %79 = arith.mulf %73, %78 : vector<4x6x6xf32>
    %80 = tpu.reciprocal %79 {approx = true} : vector<4x6x6xf32> -> vector<4x6x6xf32>
    %81 = arith.mulf %70, %80 : vector<4x6x6xf32>
    %82 = vector.shape_cast %81 : vector<4x6x6xf32> to vector<1x4x6x6xf32>
    %cst_24 = arith.constant dense<0.000000e+00> : vector<1xf32>
    %83 = vector.multi_reduction <add>, %82, %cst_24 [1, 2, 3] : vector<1x4x6x6xf32> to vector<1xf32>
    %84 = vector.shape_cast %83 : vector<1xf32> to vector<1x1x1x1xf32>
    %85 = vector.extract %84[0, 0, 0, 0] : f32 from vector<1x1x1x1xf32>
    %86 = vector.broadcast %85 : f32 to vector<1x128xf32>
    %c0_25 = arith.constant 0 : index
    %c0_26 = arith.constant 0 : index
    %87 = vector.load %arg4[%c0_25, %c0_26] : memref<1x128xf32, #tpu.memory_space<vmem>>, vector<1x128xf32>
    tpu.vector_store %arg4[%c0_25, %c0_26], %86 {strides = array<i32>} : memref<1x128xf32, #tpu.memory_space<vmem>>, vector<1x128xf32>,
    return
  }
  func.func @transform_0(%arg0: i32) -> (i32, i32, i32) {
    %c0_i32 = arith.constant 0 : i32
    %c0_i32_0 = arith.constant 0 : i32
    %c0_i32_1 = arith.constant 0 : i32
    return %arg0, %c0_i32, %c0_i32_0 : i32, i32, i32
  }
  func.func @transform_1(%arg0: i32) -> (i32, i32, i32) {
    %c0_i32 = arith.constant 0 : i32
    %c0_i32_0 = arith.constant 0 : i32
    %c0_i32_1 = arith.constant 0 : i32
    return %arg0, %c0_i32, %c0_i32_0 : i32, i32, i32
  }
  func.func @transform_2(%arg0: i32) -> (i32, i32) {
    %c0_i32 = arith.constant 0 : i32
    %c0_i32_0 = arith.constant 0 : i32
    %c0_i32_1 = arith.constant 0 : i32
    return %c0_i32, %c0_i32_0 : i32, i32
  }
  func.func @transform_3(%arg0: i32) -> (i32, i32) {
    %c0_i32 = arith.constant 0 : i32
    %c0_i32_0 = arith.constant 0 : i32
    return %c0_i32, %arg0 : i32, i32
  }
}

</mosaic_0001>

<bundles_post_ra>
// kernel: tpu_custom_call.1
= control target key start
LH: loop header
LB: loop body
LE: loop exit
PB: predicated region body
PF: predicated region fallthrough
CT: control target
= control target key end

     0   :  { %8 = vsyncpa [#allocation3], 0  ;;  %s3621_s0 = inlined_call_operand.hbm [shape: f32[8,16,16], index: 0, kind: input, shape index: {}]   ;;  %s3622_s1 = inlined_call_operand.hbm [shape: f32[8,16,16], index: 1, kind: input, shape index: {}]   ;;  %s3623_s2 = inlined_call_operand.vmem [shape: f32[16,6], index: 2, kind: input, shape index: {}]   ;;  %s3624_s3 = inlined_call_operand.hbm [shape: f32[1,256], index: 3, kind: output, shape index: {}]  }
   0x1   :  { %10 = vsyncpa [#allocation3 + $0x1], 0 }
   0x2   :  { %11 = vsyncpa [#allocation6], 0 }
   0x3   :  { %13 = vsyncpa [#allocation6 + $0x1], 0 }
   0x4   :  { %14 = vsyncpa [#allocation4], 0 }
   0x5   :  { %16 = vsyncpa [#allocation4 + $0x1], 0  ;;  %s2451_s12 = smov 0   ;;  %s2453_s13 = smov 0  }
   0x6   :  { %s2455_s14 = smov 0   ;;  %s2457_s15 = smov 0  }
   0x7 LB: > { %s2472_s16 = sadd.s32 4294967295, %s2424_s15   ;;  %s2058_s17 = sadd.s32 4294967294, %s2424_s15   ;;  %s2424_s15 = sphi %s2457_s15, %s3766_s15   ;;  %s2420_s14 = sphi %s2455_s14, %s3765_s14   ;;  %s2416_s13 = sphi %s2453_s13, %s3764_s13   ;;  %s2412_s12 = sphi %s2451_s12, %s3763_s12  }
   0x8   : > { %s2476_s18 = sadd.s32 1, %s2424_s15   ;;  %s29_s19 = sadd.s32 1, %s2420_s14 }
   0x9   : > { %s26_s20 = ssub.s32 %s2424_s15, %s2476_s18  ;;  %p36_p0 = scmp.ne.s32.totalorder %s2420_s14, %s2416_s13 }
   0xa   : > { %p27_p1 = scmp.eq.s32.totalorder %s26_s20, 0  ;;  %p37_p2 = scmp.eq.s32.totalorder %s2424_s15, 0 }
   0xb   : > { %p42_p3 = scmp.ne.s32.totalorder %s2416_s13, %s2412_s12  ;;  %p43_p4 = scmp.eq.s32.totalorder %s2472_s16, 0 }
   0xc   : > { %s2488_s21 = scalar_select %p27_p1, %s2420_s14, %s29_s19  }
   0xd   : > { %p2490_p5 = por %p37_p2, %p36_p0  ;;  %p2494_p6 = por %p43_p4, %p42_p3 }
   0xe   : > { %p113_p7 = scmp.eq.s32.totalorder %s2472_s16, 1  ;;  %p119_p8 = scmp.eq.s32.totalorder %s2058_s17, 1 }
   0xf   : > { %s3653_s23 = scalar_select %p2494_p6, 1, 0 }
  0x10   : > { %p2250_p10 = scmp.lt.s32.totalorder %s2424_s15, 2  ;;  %p2501_p11 = por %p113_p7, %p36_p0 }
  0x11   : > { %p2505_p12 = por %p119_p8, %p42_p3  ;;  %s2510_s26 = sand.u32 1, %s2420_s14  }
  0x12   : > { %s3654_s24 = scalar_select %p2501_p11, 1, 0 }
  0x13   : > { %s3655_s25 = scalar_select %p2505_p12, 1, 0 }
  0x14   : > { %s2116_s27 = sshll.u32 %s2424_s15, 10  ;;  %s2061_s28 = sshll.u32 %s2510_s26, 6 }
  0x15   : > { %s2519_s4 = scalar_lea.hbm %s3621_s0, %s2116_s27  ;;  %s146_s5 = scalar_lea.vmem [#allocation2], %s2061_s28 }
  0x16   : > { %s154_s6 = sshll.u32 %s146_s5, 4  ;;  %p2525_p13 = pnand %p2250_p10, %p2490_p5  ;;  %s2529_s6 = int_to_ptr.vmem [resolvable:$true] %s154_s6 }
  0x17   : > { %s143_s8 = scalar_lea.sflag [#allocation3], %s2510_s26  ;;  %s2294_s9 = scalar_lea.hbm %s2519_s4, 1024 }
  0x18   : > { %p2295_p0 = scmp.ne.s32.totalorder %s2519_s4, %s2294_s9  ;;  %p2296_p1 = pneg %p2525_p13 }
  0x19   : > { %s2299_s17 = scalar_lea.hbm %s3621_s0, 2048  ;;  %p2300_p4 = scmp.lt.u32.totalorder %s2519_s4, %s3621_s0 }
  0x1a   : > { %p2297_p2 = pnand %p2296_p1, %p2295_p0  ;;  %p2301_p5 = scmp.lt.u32.totalorder %s2299_s17, %s2294_s9 }
  0x1b   : > { %p2303_p8 = scmp.lt.u32.totalorder %s2294_s9, %s2519_s4 }
  0x1c   : > { %p2298_p3 = pneg %p2297_p2  ;;  %p2302_p7 = por %p2301_p5, %p2300_p4 }
  0x1e   : > { %p2304_p10 = por %p2303_p8, %p2302_p7 }
  0x20   : > { %p2305_p9 = pnand %p2304_p10, %p2298_p3 }
  0x22   : > { %2308 = shalt.err (!%p2305_p9)
}
  0x23   : > { %s2309_s22 = scalar_lea.vmem %s2529_s6, 1024  ;;  %s2426_s29 = smov [#allocation2]  }
  0x24   : > { %p2310_p0 = scmp.ne.s32.totalorder %s2529_s6, %s2309_s22  ;;  %s2314_s30 = sshll.u32 %s2426_s29, 4  ;;  %s2315_s30 = int_to_ptr.vmem [resolvable:$false] %s2314_s30 }
  0x25   : > { %s2316_s5 = scalar_lea.vmem %s2315_s30, 2048  ;;  %p2317_p11 = scmp.lt.s32.totalorder %s2529_s6, %s2315_s30 }
  0x26   : > { %p2312_p2 = pnand %p2310_p0, %p2296_p1  ;;  %p2318_p4 = scmp.lt.s32.totalorder %s2316_s5, %s2309_s22 }
  0x28   : > { %p2313_p12 = pneg %p2312_p2  ;;  %p2319_p5 = por %p2318_p4, %p2317_p11 }
  0x2a   : > { %p2320_p7 = pnand %p2319_p5, %p2313_p12 }
  0x2c   : > { %2323 = shalt.err (!%p2320_p7)
}
  0x2d   : > { %s2427_s9 = smov 128   ;;  %s2428_s10 = smov 8  }
  0x2e   : > { %2242 = dma.hbm_to_vmem [thread:$0]  (!%p2525_p13), %s2519_s4, 1024, %s2529_s6, %s143_s8, %s2427_s9, %s2427_s9, %s2428_s10  }
  0x2f   : > { %p2069_p9 = scmp.ge.s32.totalorder %s2424_s15, 1  ;;  %p184_p11 = scmp.lt.s32.totalorder %s2424_s15, 3 }
  0x30   : > { %s2573_s20 = scalar_lea.hbm %s3622_s1, %s2116_s27  ;;  %s168_s22 = scalar_lea.vmem [#allocation5], %s2061_s28 }
  0x31   : > { %p2564_p12 = pnand %p2069_p9, %p184_p11  ;;  %s176_s29 = sshll.u32 %s168_s22, 4  ;;  %s2577_s29 = int_to_ptr.vmem [resolvable:$true] %s176_s29 }
  0x32   : > { %s165_s4 = scalar_lea.sflag [#allocation6], %s2510_s26  ;;  %s2324_s6 = scalar_lea.hbm %s2573_s20, 1024 }
  0x33   : > { %p2325_p3 = scmp.ne.s32.totalorder %s2573_s20, %s2324_s6  ;;  %s2329_s27 = scalar_lea.hbm %s3622_s1, 2048 }
  0x34   : > { %p2330_p0 = scmp.lt.u32.totalorder %s2573_s20, %s3622_s1  ;;  %p2331_p2 = scmp.lt.u32.totalorder %s2329_s27, %s2324_s6 }
  0x35   : > { %p2327_p8 = pnand %p2325_p3, %p2296_p1  ;;  %p2333_p5 = scmp.lt.u32.totalorder %s2324_s6, %s2573_s20 }
  0x36   : > { %p2332_p4 = por %p2331_p2, %p2330_p0 }
  0x37   : > { %p2328_p10 = pneg %p2327_p8 }
  0x38   : > { %p2334_p7 = por %p2333_p5, %p2332_p4 }
  0x3a   : > { %p2335_p9 = pnand %p2334_p7, %p2328_p10 }
  0x3c   : > { %2338 = shalt.err (!%p2335_p9)
}
  0x3d   : > { %s2339_s28 = scalar_lea.vmem %s2577_s29, 1024  ;;  %s2429_s19 = smov [#allocation5]  }
  0x3e   : > { %p2340_p11 = scmp.ne.s32.totalorder %s2577_s29, %s2339_s28  ;;  %s2344_s22 = sshll.u32 %s2429_s19, 4  ;;  %s2345_s22 = int_to_ptr.vmem [resolvable:$false] %s2344_s22 }
  0x3f   : > { %s2346_s8 = scalar_lea.vmem %s2345_s22, 2048  ;;  %p2347_p6 = scmp.lt.s32.totalorder %s2577_s29, %s2345_s22 }
  0x40   : > { %p2342_p3 = pnand %p2340_p11, %p2296_p1  ;;  %p2348_p0 = scmp.lt.s32.totalorder %s2346_s8, %s2339_s28 }
  0x42   : > { %p2343_p8 = pneg %p2342_p3  ;;  %p2349_p2 = por %p2348_p0, %p2347_p6 }
  0x44   : > { %p2350_p4 = pnand %p2349_p2, %p2343_p8 }
  0x46   : > { %2353 = shalt.err (!%p2350_p4)
}
  0x47   : > { %2245 = dma.hbm_to_vmem [thread:$0]  (!%p2525_p13), %s2573_s20, 1024, %s2577_s29, %s165_s4, %s2427_s9, %s2427_s9, %s2428_s10  }
  0x48   : > { %188 = sbr.rel (%p2564_p12) target bundleno = 774 (0x306), region = 32 }
  0x4f   : > { %s2611_s6 = sand.u32 1, %s2416_s13   ;;  %p3658_p6 = scmp.ne.s32.totalorder %s3653_s23, 0 }
  0x50   : > { %s2070_s30 = sshll.u32 %s2611_s6, 6  ;;  %s191_s27 = scalar_lea.sflag [#allocation3], %s2611_s6 }
  0x51   : > { %s2615_s7 = scalar_lea.vmem [#allocation2], %s2070_s30 }
  0x52   : > { %2399 = dma.done.wait (%p3658_p6), %s191_s27, 1024  }
  0x53   : > { %2401 = vsyncadd (%p3658_p6), %s191_s27, 4294966272  ;;  %s200_s26 = scalar_lea.sflag [#allocation6], %s2611_s6  ;;  %s2622_s9 = scalar_lea.vmem [#allocation5], %s2070_s30 }
  0x54   : > { %2403 = dma.done.wait (%p3658_p6), %s200_s26, 1024  }
  0x55   : > { %2405 = vsyncadd (%p3658_p6), %s200_s26, 4294966272  ;;  %vm274_vm0 = vcmask 130048   ;;  %v248_v0 = vld [vmem:[%s3623_s2] sm:$0xff]  ;;  %v249_v1 = vld [vmem:[%s3623_s2 + $0x8] sm:$0xff]  ;;  %vm960_vm1 = vcmask 1044480   ;;  %vm1141_vm2 = vcmask 1043456  }
  0x56   : > { %v2635_v2 = vld [vmem:[%s2615_s7] sm:$0xff]  ;;  %v2225_v3 = vpack.c.bf16 %v249_v1, %v248_v0  ;;  %v2645_v6 = vld [vmem:[%s2615_s7 + $0x28] sm:$0xff]  ;;  %v2650_v8 = vld [vmem:[%s2615_s7 + $0x30] sm:$0xff]  ;;  %vm1322_vm3 = vcmask 1042432   ;;  %vm1423_vm4 = vcmask 1041408   ;;  %vm1524_vm5 = vcmask 1040384  }
  0x57   : > { %2165 = vmatprep.mubr.msk.f32.mxu0 %vm274_vm0, %v2635_v2  ;;  %v2640_v4 = vld [vmem:[%s2615_s7 + $0x20] sm:$0xff]  ;;  %v255_v7 = vmul.f32 %v2645_v6, %v2645_v6  ;;  %v233_v9 = vld [vmem:[%s2615_s7 + $0x8] sm:$0xff]  ;;  %v256_v10 = vmul.f32 %v2650_v8, %v2650_v8  ;;  %v2656_v11 = vld [vmem:[%s2615_s7 + $0x38] sm:$0xff]  ;;  %v250_v35 = vmul.f32 %v2635_v2, %v2635_v2  ;;  %vm1937_vm6 = vcmask 46080   ;;  %s229_s23 = scalar_lea.vmem [#allocation7], %s2611_s6  ;;  %s2112_s5 = sshll.u32 %s2472_s16, 4 }
  0x58   : > { %v254_v5 = vmul.f32 %v2640_v4, %v2640_v4  ;;  %2226 = vmatprep.subr.bf16.mxu0 %v2225_v3  ;;  %2229 = vmatprep.subr.bf16.mxu1 %v2225_v3  ;;  %v240_v12 = vld [vmem:[%s2622_s9] sm:$0xff]  ;;  %v234_v13 = vld [vmem:[%s2615_s7 + $0x10] sm:$0xff]  ;;  %v257_v14 = vmul.f32 %v2656_v11, %v2656_v11  ;;  %v241_v15 = vld [vmem:[%s2622_s9 + $0x8] sm:$0xff]  ;;  %v251_v37 = vmul.f32 %v233_v9, %v233_v9  ;;  %s1969_s4 = sshll.u32 %s229_s23, 4  ;;  %s3579_s22 = scalar_lea.hbm %s3624_s3, %s2112_s5  ;;  %s3574_s4 = int_to_ptr.vmem [resolvable:$true] %s1969_s4 }
  0x59   : > { %2228 = vmatpush3.bf16.msra.mxu0 %v2225_v3  ;;  %2230 = vmatpush3.bf16.msra.mxu1 %v2225_v3  ;;  %v235_v16 = vld [vmem:[%s2615_s7 + $0x18] sm:$0xff]  ;;  %v258_v17 = vmul.f32 %v240_v12, %v240_v12  ;;  %v242_v18 = vld [vmem:[%s2622_s9 + $0x10] sm:$0xff]  ;;  %v259_v19 = vmul.f32 %v241_v15, %v241_v15  ;;  %v244_v22 = vld [vmem:[%s2622_s9 + $0x20] sm:$0xff]  ;;  %v266_v31 = vmul.f32 %v240_v12, %v2635_v2  ;;  %s1957_s8 = scalar_lea.sflag [#allocation4], %s2611_s6  ;;  %s2354_s30 = scalar_lea.vmem %s3574_s4, 16 }
  0x5a   : > { %2195 = vmatprep.mubr.msk.f32.mxu1 %vm274_vm0, %v254_v5  ;;  %v243_v20 = vld [vmem:[%s2622_s9 + $0x18] sm:$0xff]  ;;  %v260_v21 = vmul.f32 %v242_v18, %v242_v18  ;;  %v262_v24 = vmul.f32 %v244_v22, %v244_v22  ;;  %v245_v25 = vld [vmem:[%s2622_s9 + $0x28] sm:$0xff]  ;;  %v246_v26 = vld [vmem:[%s2622_s9 + $0x30] sm:$0xff]  ;;  %v267_v32 = vmul.f32 %v241_v15, %v233_v9  ;;  %v268_v33 = vmul.f32 %v242_v18, %v234_v13  ;;  %p2355_p13 = scmp.ne.s32.totalorder %s3574_s4, %s2354_s30  ;;  %p3760_p1 = scmp.ne.s32.totalorder %s3654_s24, 0 }
  0x5b   : > { %v261_v23 = vmul.f32 %v243_v20, %v243_v20  ;;  %v263_v27 = vmul.f32 %v245_v25, %v245_v25  ;;  %v264_v28 = vmul.f32 %v246_v26, %v246_v26  ;;  %v247_v29 = vld [vmem:[%s2622_s9 + $0x38] sm:$0xff]  ;;  %v269_v34 = vmul.f32 %v243_v20, %v235_v16  ;;  %s2430_s16 = smov [#allocation7]  }
  0x5c   : > { %2166 = vmatmul.mubr.msk.f32.vlgmr.msra.gmra.mrb[0].mxu0 %vm274_vm0, %v233_v9  ;;  %2196 = vmatmul.mubr.msk.f32.vlgmr.msra.gmra.mrb[0].mxu1 %vm274_vm0, %v255_v7  ;;  %v265_v30 = vmul.f32 %v247_v29, %v247_v29  ;;  %v270_v36 = vmul.f32 %v244_v22, %v2640_v4  ;;  %v271_v38 = vmul.f32 %v245_v25, %v2645_v6  ;;  %p2356_p12 = pnand %p2355_p13, %p3760_p1  ;;  %s2358_s27 = sshll.u32 %s2430_s16, 4  ;;  %s2359_s27 = int_to_ptr.vmem [resolvable:$false] %s2358_s27 }
  0x5d   : > { %2168 = vmatprep.mubr.msk.f32.mxu0 %vm274_vm0, %v234_v13  ;;  %2198 = vmatprep.mubr.msk.f32.mxu1 %vm274_vm0, %v256_v10  ;;  %v252_v39 = vmul.f32 %v234_v13, %v234_v13  ;;  %v272_v40 = vmul.f32 %v246_v26, %v2650_v8  ;;  %v253_v41 = vmul.f32 %v235_v16, %v235_v16  ;;  %s2360_s7 = scalar_lea.vmem %s2359_s27, 32  ;;  %p2361_p5 = scmp.lt.s32.totalorder %s3574_s4, %s2359_s27 }
  0x5e   : > { %v273_v42 = vmul.f32 %v247_v29, %v2656_v11  ;;  %p2357_p10 = pneg %p2356_p12  ;;  %p2362_p7 = scmp.lt.s32.totalorder %s2360_s7, %s2354_s30 }
  0x60   : > { %2169 = vmatmul.mubr.msk.f32.gmra.mrb[2].mxu0 %vm274_vm0, %v235_v16  ;;  %2199 = vmatmul.mubr.msk.f32.gmra.mrb[2].mxu1 %vm274_vm0, %v257_v14  ;;  %p2363_p9 = por %p2362_p7, %p2361_p5 }
  0x61   : > { %2171 = vmatprep.mubr.msk.f32.mxu0 %vm274_vm0, %v2640_v4  ;;  %2201 = vmatprep.mubr.msk.f32.mxu1 %vm274_vm0, %v258_v17 }
  0x62   : > { %p2364_p11 = pnand %p2363_p9, %p2357_p10 }
  0x64   : > { %2172 = vmatmul.mubr.msk.f32.gmra.mrb[4].mxu0 %vm274_vm0, %v2645_v6  ;;  %2202 = vmatmul.mubr.msk.f32.gmra.mrb[4].mxu1 %vm274_vm0, %v259_v19 }
  0x65   : > { %2174 = vmatprep.mubr.msk.f32.mxu0 %vm274_vm0, %v2650_v8  ;;  %2204 = vmatprep.mubr.msk.f32.mxu1 %vm274_vm0, %v260_v21 }
  0x68   : > { %2175 = vmatmul.mubr.msk.f32.gmra.mrb[6].mxu0 %vm274_vm0, %v2656_v11  ;;  %2205 = vmatmul.mubr.msk.f32.gmra.mrb[6].mxu1 %vm274_vm0, %v261_v23 }
  0x69   : > { %2177 = vmatprep.mubr.msk.f32.mxu0 %vm274_vm0, %v240_v12  ;;  %2207 = vmatprep.mubr.msk.f32.mxu1 %vm274_vm0, %v262_v24 }
  0x6c   : > { %2178 = vmatmul.mubr.msk.f32.gmra.mrb[8].mxu0 %vm274_vm0, %v241_v15  ;;  %2208 = vmatmul.mubr.msk.f32.gmra.mrb[8].mxu1 %vm274_vm0, %v263_v27 }
  0x6d   : > { %2180 = vmatprep.mubr.msk.f32.mxu0 %vm274_vm0, %v242_v18  ;;  %2210 = vmatprep.mubr.msk.f32.mxu1 %vm274_vm0, %v264_v28 }
  0x70   : > { %2181 = vmatmul.mubr.msk.f32.gmra.mrb[10].mxu0 %vm274_vm0, %v243_v20  ;;  %2211 = vmatmul.mubr.msk.f32.gmra.mrb[10].mxu1 %vm274_vm0, %v265_v30 }
  0x71   : > { %2183 = vmatprep.mubr.msk.f32.mxu0 %vm274_vm0, %v244_v22  ;;  %2213 = vmatprep.mubr.msk.f32.mxu1 %vm274_vm0, %v266_v31 }
  0x74   : > { %2184 = vmatmul.mubr.msk.f32.gmra.mrb[12].mxu0 %vm274_vm0, %v245_v25  ;;  %2214 = vmatmul.mubr.msk.f32.gmra.mrb[12].mxu1 %vm274_vm0, %v267_v32 }
  0x75   : > { %2186 = vmatprep.mubr.msk.f32.mxu0 %vm274_vm0, %v246_v26  ;;  %2216 = vmatprep.mubr.msk.f32.mxu1 %vm274_vm0, %v268_v33 }
  0x78   : > { %2187 = vmatmul.mubr.msk.f32.gmra.mrb[14].mxu0 %vm274_vm0, %v247_v29  ;;  %2217 = vmatmul.mubr.msk.f32.gmra.mrb[14].mxu1 %vm274_vm0, %v269_v34 }
  0x79   : > { %2189 = vmatprep.mubr.msk.f32.mxu0 %vm274_vm0, %v250_v35  ;;  %2219 = vmatprep.mubr.msk.f32.mxu1 %vm274_vm0, %v270_v36 }
  0x7c   : > { %2190 = vmatmul.mubr.msk.f32.gmra.mrb[16].mxu0 %vm274_vm0, %v251_v37  ;;  %2220 = vmatmul.mubr.msk.f32.gmra.mrb[16].mxu1 %vm274_vm0, %v271_v38 }
  0x7d   : > { %2192 = vmatprep.mubr.msk.f32.mxu0 %vm274_vm0, %v252_v39  ;;  %2222 = vmatprep.mubr.msk.f32.mxu1 %vm274_vm0, %v272_v40 }
  0x80   : > { %2193 = vmatmul.mubr.msk.f32.gmra.mrb[18].mxu0 %vm274_vm0, %v253_v41  ;;  %2223 = vmatmul.mubr.msk.f32.gmra.mrb[18].mxu1 %vm274_vm0, %v273_v42 }
 0x12f   : > { %v2167_v43 = vpop.f32.mrb[0].mxu0  ;;  %v2197_v44 = vpop.f32.mrb[0].mxu1 }
 0x130   : > { %v2720_v45 = vmul.f32 0.10936069, %v2167_v43  ;;  %v1062_v46 = vmul.f32 0.21300554, %v2167_v43  ;;  %v1243_v47 = vmul.f32 0.26601171, %v2167_v43 }
 0x131   : > { %v2722_v48 = vmul.f32 0.007598758, %v2167_v43  ;;  %v2724_v49 = vmul.f32 0.0010283801, %v2167_v43  ;;  %v2727_v52 = vmul.f32 0.036000773, %v2167_v43 }
 0x132   : > { %v962_v50 = vrot.slane %v2720_v45, 3  ;;  %v1143_v51 = vrot.slane %v1062_v46, 4  ;;  %v461_v53 = vpop.f32.mrb[1].mxu0  ;;  %v561_v54 = vpop.f32.mrb[1].mxu1  ;;  %v1324_v55 = vrot.slane %v1243_v47, 5  ;;  %v1425_v56 = vrot.slane %v1062_v46, 6 }
 0x133   : > { %3659 = vst [vmem:[#allocation11_spill] sm:$0xff] %v2724_v49  ;;  %v1526_v57 = vrot.slane %v2720_v45, 7  ;;  %v2730_v58 = vmul.f32 0.10936069, %v2197_v44  ;;  %v2732_v59 = vpop.f32.mrb[2].mxu0  ;;  %v2751_v8 = vpop.f32.mrb[2].mxu1 }
 0x134   : > { %v2736_v62 = vmul.f32 0.21300554, %v2197_v44  ;;  %v2738_v63 = vmul.f32 0.26601171, %v2197_v44  ;;  %v2742_v2 = vmul.f32 0.036000773, %v2197_v44 }
 0x135   : > { %v992_v0 = vrot.slane %v2730_v58, 3  ;;  %v1556_v1 = vrot.slane %v2730_v58, 7  ;;  %v2744_v3 = vmul.f32 0.007598758, %v2197_v44  ;;  %v2749_v7 = vmul.f32 0.0010283801, %v2197_v44 }
 0x136   : > { %v1173_v4 = vrot.slane %v2736_v62, 4  ;;  %v1354_v5 = vrot.slane %v2738_v63, 5  ;;  %v1455_v6 = vrot.slane %v2736_v62, 6  ;;  %v660_v9 = vmul.f32 0.0010283801, %v461_v53  ;;  %v2753_v23 = vpop.f32.mrb[3].mxu0 }
 0x137   : > { %3660 = vst [vmem:[#allocation12_spill] sm:$0xff] %v2744_v3  ;;  %3661 = vst [vmem:[#allocation13_spill] sm:$0xff] %v2749_v7  ;;  %v680_v10 = vmul.f32 0.007598758, %v461_v53  ;;  %v780_v11 = vmul.f32 0.036000773, %v461_v53 }
 0x138   : > { %v880_v12 = vmul.f32 0.10936069, %v461_v53  ;;  %v1061_v13 = vmul.f32 0.21300554, %v461_v53  ;;  %v1242_v14 = vmul.f32 0.26601171, %v461_v53 }
 0x139   : > { %v720_v15 = vrot.slane %v680_v10, 1  ;;  %v820_v16 = vrot.slane %v780_v11, 2  ;;  %v670_v17 = vmul.f32 0.0010283801, %v561_v54  ;;  %v690_v18 = vmul.f32 0.007598758, %v561_v54 }
 0x13a   : > { %v961_v19 = vrot.slane %v880_v12, 3  ;;  %v1142_v20 = vrot.slane %v1061_v13, 4  ;;  %v1323_v21 = vrot.slane %v1242_v14, 5  ;;  %v1424_v22 = vrot.slane %v1061_v13, 6  ;;  %v2755_v24 = vpop.f32.mrb[3].mxu1  ;;  %v2757_v29 = vpop.f32.mrb[4].mxu0 }
 0x13b   : > { %v760_v25 = vadd.f32 %v720_v15, %v660_v9  ;;  %v1525_v26 = vrot.slane %v880_v12, 7  ;;  %v730_v27 = vrot.slane %v690_v18, 1  ;;  %v790_v28 = vmul.f32 0.036000773, %v561_v54  ;;  %v2759_v30 = vpop.f32.mrb[4].mxu1  ;;  %v2765_v35 = vpop.f32.mrb[5].mxu0 }
 0x13c   : > { %v963_v31 = vsel %vm960_vm1, %v961_v19, %v962_v50  ;;  %v1144_v32 = vsel %vm1141_vm2, %v1142_v20, %v1143_v51  ;;  %v1325_v33 = vsel %vm1322_vm3, %v1323_v21, %v1324_v55  ;;  %v1426_v34 = vsel %vm1423_vm4, %v1424_v22, %v1425_v56  ;;  %v2767_v36 = vpop.f32.mrb[5].mxu1  ;;  %v2770_v41 = vpop.f32.mrb[6].mxu0 }
 0x13d   : > { %v860_v37 = vadd.f32 %v820_v16, %v760_v25  ;;  %v1527_v38 = vsel %vm1524_vm5, %v1525_v26, %v1526_v57  ;;  %v770_v39 = vadd.f32 %v730_v27, %v670_v17  ;;  %v830_v40 = vrot.slane %v790_v28, 2  ;;  %v2772_v42 = vpop.f32.mrb[6].mxu1  ;;  %v2780_v53 = vpop.f32.mrb[7].mxu0 }
 0x13e   : > { %v900_v43 = vmul.f32 0.10936069, %v561_v54  ;;  %v1081_v44 = vmul.f32 0.21300554, %v561_v54  ;;  %v1262_v45 = vmul.f32 0.26601171, %v561_v54 }
 0x13f   : > { %v1041_v46 = vadd.f32 %v963_v31, %v860_v37  ;;  %v870_v47 = vadd.f32 %v830_v40, %v770_v39  ;;  %v2775_v50 = vmul.f32 0.10936069, %v2732_v59  ;;  %v2778_v51 = vmul.f32 0.21300554, %v2732_v59  ;;  %v2782_v55 = vpop.f32.mrb[7].mxu1  ;;  %v2784_v9 = vpop.f32.mrb[8].mxu0 }
 0x140   : > { %v991_v56 = vrot.slane %v900_v43, 3  ;;  %v1172_v57 = vrot.slane %v1081_v44, 4  ;;  %v1353_v62 = vrot.slane %v1262_v45, 5  ;;  %v1454_v63 = vrot.slane %v1081_v44, 6  ;;  %v2786_v10 = vpop.f32.mrb[8].mxu1  ;;  %v2790_v14 = vpop.f32.mrb[9].mxu0 }
 0x141   : > { %v1222_v12 = vadd.f32 %v1144_v32, %v1041_v46  ;;  %v1555_v13 = vrot.slane %v900_v43, 7  ;;  %v2792_v15 = vpop.f32.mrb[9].mxu1  ;;  %v2804_v25 = vmul.f32 0.26601171, %v2732_v59  ;;  %v2820_v31 = vmul.f32 0.0010283801, %v2732_v59 }
 0x142   : > { %v993_v16 = vsel %vm960_vm1, %v991_v56, %v992_v0  ;;  %v1174_v17 = vsel %vm1141_vm2, %v1172_v57, %v1173_v4  ;;  %v1355_v18 = vsel %vm1322_vm3, %v1353_v62, %v1354_v5  ;;  %v1456_v19 = vsel %vm1423_vm4, %v1454_v63, %v1455_v6 }
 0x143   : > { %v1403_v20 = vadd.f32 %v1325_v33, %v1222_v12  ;;  %v1051_v21 = vadd.f32 %v993_v16, %v870_v47  ;;  %v1557_v22 = vsel %vm1524_vm5, %v1555_v13, %v1556_v1  ;;  %v2806_v26 = vpop.f32.mrb[10].mxu0  ;;  %v2808_v27 = vpop.f32.mrb[10].mxu1  ;;  %v965_v0 = vrot.slane %v2775_v50, 3  ;;  %3663 = vst [vmem:[#allocation15_spill] sm:$0xff] %v2820_v31 }
 0x144   : > { %v1146_v4 = vrot.slane %v2778_v51, 4  ;;  %v1428_v5 = vrot.slane %v2778_v51, 6  ;;  %v2814_v6 = vmul.f32 0.007598758, %v2732_v59  ;;  %v2817_v1 = vmul.f32 0.036000773, %v2732_v59 }
 0x145   : > { %v1504_v28 = vadd.f32 %v1426_v34, %v1403_v20  ;;  %v1232_v58 = vadd.f32 %v1174_v17, %v1051_v21  ;;  %v2822_v32 = vpop.f32.mrb[11].mxu0  ;;  %v2824_v33 = vpop.f32.mrb[11].mxu1  ;;  %v1327_v37 = vrot.slane %v2804_v25, 5  ;;  %v1529_v39 = vrot.slane %v2775_v50, 7 }
 0x146   : > { %3662 = vst [vmem:[#allocation14_spill] sm:$0xff] %v2814_v6  ;;  %v2829_v40 = vmul.f32 0.10936069, %v2751_v8  ;;  %v2832_v34 = vmul.f32 0.21300554, %v2751_v8 }
 0x147   : > { %v2834_v43 = vadd.f32 %v1527_v38, %v1504_v28  ;;  %v1413_v44 = vadd.f32 %v1355_v18, %v1232_v58  ;;  %v2838_v46 = vpop.f32.mrb[12].mxu0  ;;  %v2840_v47 = vpop.f32.mrb[12].mxu1  ;;  %v2845_v56 = vmul.f32 0.26601171, %v2751_v8  ;;  %v2853_v12 = vmul.f32 0.036000773, %v2751_v8 }
 0x148   : > { %v995_v51 = vrot.slane %v2829_v40, 3  ;;  %v2847_v57 = vpop.f32.mrb[13].mxu0  ;;  %v2849_v38 = vpop.f32.mrb[13].mxu1  ;;  %v1458_v63 = vrot.slane %v2832_v34, 6  ;;  %v2856_v13 = vmul.f32 0.007598758, %v2751_v8 }
 0x149   : > { %v1514_v62 = vadd.f32 %v1456_v19, %v1413_v44  ;;  %v2859_v16 = vmul.f32 0.0010283801, %v2751_v8  ;;  %v661_v17 = vmul.f32 0.0010283801, %v2753_v23  ;;  %v681_v18 = vmul.f32 0.007598758, %v2753_v23 }
 0x14a   : > { %3664 = vst [vmem:[#allocation16_spill] sm:$0xff] %v2856_v13  ;;  %v1559_v21 = vrot.slane %v2829_v40, 7  ;;  %v781_v19 = vmul.f32 0.036000773, %v2753_v23  ;;  %v882_v25 = vmul.f32 0.10936069, %v2753_v23 }
 0x14b   : > { %3665 = vst [vmem:[#allocation17_spill] sm:$0xff] %v2859_v16  ;;  %v1615_v20 = vadd.f32 %v1557_v22, %v1514_v62  ;;  %v2866_v28 = vpop.f32.mrb[14].mxu0  ;;  %v1357_v58 = vrot.slane %v2845_v56, 5  ;;  %v721_v44 = vrot.slane %v681_v18, 1  ;;  %v1063_v11 = vmul.f32 0.21300554, %v2753_v23 }
 0x14c   : > { %v1244_v8 = vmul.f32 0.26601171, %v2753_v23  ;;  %v821_v61 = vrot.slane %v781_v19, 2  ;;  %v964_v22 = vrot.slane %v882_v25, 3  ;;  %v1528_v62 = vrot.slane %v882_v25, 7  ;;  %v2874_v40 = vpop.f32.mrb[14].mxu1 }
 0x14d   : > { %v2872_v45 = vadd.f32 %v2742_v2, %v1615_v20  ;;  %v2876_v54 = vpop.f32.mrb[15].mxu0  ;;  %v761_v59 = vadd.f32 %v721_v44, %v661_v17  ;;  %v1145_v60 = vrot.slane %v1063_v11, 4  ;;  %v1427_v7 = vrot.slane %v1063_v11, 6  ;;  %v2878_v56 = vpop.f32.mrb[15].mxu1 }
 0x14e   : > { %v1326_v50 = vrot.slane %v1244_v8, 5  ;;  %v966_v18 = vsel %vm960_vm1, %v964_v22, %v965_v0  ;;  %v1530_v23 = vsel %vm1524_vm5, %v1528_v62, %v1529_v39  ;;  %v671_v2 = vmul.f32 0.0010283801, %v2755_v24 }
 0x14f   : > { %3666 = vst [vmem:[#allocation18_spill] sm:$0xff] %v2872_v45  ;;  %v691_v20 = vmul.f32 0.007598758, %v2755_v24  ;;  %v2884_v19 = vpop.f32.mrb[16].mxu0  ;;  %v2886_v25 = vpop.f32.mrb[16].mxu1  ;;  %v861_v31 = vadd.f32 %v821_v61, %v761_v59  ;;  %v1147_v17 = vsel %vm1141_vm2, %v1145_v60, %v1146_v4  ;;  %v1429_v11 = vsel %vm1423_vm4, %v1427_v7, %v1428_v5 }
 0x150   : > { %v1328_v44 = vsel %vm1322_vm3, %v1326_v50, %v1327_v37  ;;  %v2891_v8 = vpop.f32.mrb[17].mxu0  ;;  %v791_v22 = vmul.f32 0.036000773, %v2755_v24  ;;  %v902_v62 = vmul.f32 0.10936069, %v2755_v24  ;;  %v2904_v6 = vpop.f32.mrb[17].mxu1 }
 0x151   : > { %3667 = vst [vmem:[#allocation19_spill] sm:$0xff] %v2891_v8  ;;  %v731_v39 = vrot.slane %v691_v20, 1  ;;  %v1042_v49 = vadd.f32 %v966_v18, %v861_v31  ;;  %v1083_v3 = vmul.f32 0.21300554, %v2755_v24  ;;  %v1264_v61 = vmul.f32 0.26601171, %v2755_v24 }
 0x152   : > { %v2899_v60 = vmul.f32 0.10936069, %v2757_v29  ;;  %v831_v37 = vrot.slane %v791_v22, 2  ;;  %v994_v7 = vrot.slane %v902_v62, 3  ;;  %v1558_v5 = vrot.slane %v902_v62, 7  ;;  %3668 = vst [vmem:[#allocation20_spill] sm:$0xff] %v2904_v6 }
 0x153   : > { %v771_v4 = vadd.f32 %v731_v39, %v671_v2  ;;  %v1223_v59 = vadd.f32 %v1147_v17, %v1042_v49  ;;  %v1175_v50 = vrot.slane %v1083_v3, 4  ;;  %v1356_v0 = vrot.slane %v1264_v61, 5 }
 0x154   : > { %v1457_v20 = vrot.slane %v1083_v3, 6  ;;  %v996_v31 = vsel %vm960_vm1, %v994_v7, %v995_v51  ;;  %v1560_v18 = vsel %vm1524_vm5, %v1558_v5, %v1559_v21  ;;  %v3669_v8 = vrot.slane %v2832_v34, 4 }
 0x155   : > { %v871_v45 = vadd.f32 %v831_v37, %v771_v4  ;;  %v1404_v24 = vadd.f32 %v1328_v44, %v1223_v59  ;;  %v1358_v39 = vsel %vm1322_vm3, %v1356_v0, %v1357_v58  ;;  %v968_v3 = vrot.slane %v2899_v60, 3 }
 0x156   : > { %v1177_v2 = vsel %vm1141_vm2, %v1175_v50, %v3669_v8  ;;  %v1459_v49 = vsel %vm1423_vm4, %v1457_v20, %v1458_v63  ;;  %v1066_v22 = vmul.f32 0.21300554, %v2757_v29  ;;  %v1247_v51 = vmul.f32 0.26601171, %v2757_v29 }
 0x157   : > { %v1052_v17 = vadd.f32 %v996_v31, %v871_v45  ;;  %v1505_v62 = vadd.f32 %v1429_v11, %v1404_v24  ;;  %v1532_v21 = vrot.slane %v2899_v60, 7  ;;  %v2916_v44 = vmul.f32 0.007598758, %v2757_v29  ;;  %v2930_v60 = vpop.f32.mrb[18].mxu0 }
 0x158   : > { %v2919_v34 = vmul.f32 0.0010283801, %v2757_v29  ;;  %v1149_v58 = vrot.slane %v1066_v22, 4  ;;  %v1330_v0 = vrot.slane %v1247_v51, 5  ;;  %v2922_v45 = vmul.f32 0.036000773, %v2757_v29 }
 0x159   : > { %3670 = vst [vmem:[#allocation21_spill] sm:$0xff] %v2916_v44  ;;  %v1233_v8 = vadd.f32 %v1177_v2, %v1052_v17  ;;  %v2924_v63 = vadd.f32 %v1530_v23, %v1505_v62  ;;  %v1431_v61 = vrot.slane %v1066_v22, 6  ;;  %v2928_v11 = vmul.f32 0.10936069, %v2759_v30  ;;  %3672 = vst [vmem:[#allocation23_spill] sm:$0xff] %v2930_v60  ;;  %v2964_v60 = vpop.f32.mrb[18].mxu1 }
 0x15a   : > { %3671 = vst [vmem:[#allocation22_spill] sm:$0xff] %v2919_v34  ;;  %v1086_v5 = vmul.f32 0.21300554, %v2759_v30  ;;  %v2935_v59 = vmul.f32 0.26601171, %v2759_v30 }
 0x15b   : > { %v1414_v37 = vadd.f32 %v1358_v39, %v1233_v8  ;;  %v998_v29 = vrot.slane %v2928_v11, 3  ;;  %v1562_v23 = vrot.slane %v2928_v11, 7  ;;  %v2940_v50 = vmul.f32 0.036000773, %v2759_v30 }
 0x15c   : > { %v2943_v20 = vmul.f32 0.007598758, %v2759_v30  ;;  %v1179_v24 = vrot.slane %v1086_v5, 4  ;;  %v1360_v2 = vrot.slane %v2935_v59, 5  ;;  %v2947_v39 = vmul.f32 0.0010283801, %v2759_v30 }
 0x15d   : > { %v1515_v31 = vadd.f32 %v1459_v49, %v1414_v37  ;;  %v1461_v17 = vrot.slane %v1086_v5, 6  ;;  %v662_v51 = vmul.f32 0.0010283801, %v2765_v35  ;;  %v682_v62 = vmul.f32 0.007598758, %v2765_v35 }
 0x15e   : > { %3673 = vst [vmem:[#allocation24_spill] sm:$0xff] %v2947_v39  ;;  %v782_v11 = vmul.f32 0.036000773, %v2765_v35  ;;  %v884_v13 = vmul.f32 0.10936069, %v2765_v35  ;;  %v2959_v5 = vadd.f32 %v2727_v52, %v2834_v43  ;;  %v2970_v43 = vpop.f32.mrb[19].mxu0 }
 0x15f   : > { %v1616_v8 = vadd.f32 %v1560_v18, %v1515_v31  ;;  %v1065_v49 = vmul.f32 0.21300554, %v2765_v35  ;;  %v722_v37 = vrot.slane %v682_v62, 1  ;;  %v1246_v59 = vmul.f32 0.26601171, %v2765_v35 }
 0x160   : > { %v672_v30 = vmul.f32 0.0010283801, %v2767_v36  ;;  %v822_v4 = vrot.slane %v782_v11, 2  ;;  %v967_v18 = vrot.slane %v884_v13, 3  ;;  %v1531_v44 = vrot.slane %v884_v13, 7 }
 0x161   : > { %v2962_v7 = vadd.f32 %v2853_v12, %v1616_v8  ;;  %v1148_v31 = vrot.slane %v1065_v49, 4  ;;  %v762_v22 = vadd.f32 %v722_v37, %v662_v51  ;;  %v1329_v16 = vrot.slane %v1246_v59, 5 }
 0x162   : > { %v1430_v34 = vrot.slane %v1065_v49, 6  ;;  %v969_v35 = vsel %vm960_vm1, %v967_v18, %v968_v3  ;;  %v692_v6 = vmul.f32 0.007598758, %v2767_v36  ;;  %v792_v52 = vmul.f32 0.036000773, %v2767_v36 }
 0x163   : > { %3674 = vst [vmem:[#allocation25_spill] sm:$0xff] %v2962_v7  ;;  %v1150_v62 = vsel %vm1141_vm2, %v1148_v31, %v1149_v58  ;;  %v862_v12 = vadd.f32 %v822_v4, %v762_v22  ;;  %v1331_v8 = vsel %vm1322_vm3, %v1329_v16, %v1330_v0  ;;  %v1533_v11 = vsel %vm1524_vm5, %v1531_v44, %v1532_v21 }
 0x164   : > { %v1432_v51 = vsel %vm1423_vm4, %v1430_v34, %v1431_v61  ;;  %v732_v13 = vrot.slane %v692_v6, 1  ;;  %v832_v49 = vrot.slane %v792_v52, 2  ;;  %v904_v37 = vmul.f32 0.10936069, %v2767_v36 }
 0x165   : > { %v1085_v3 = vmul.f32 0.21300554, %v2767_v36  ;;  %v1043_v58 = vadd.f32 %v969_v35, %v862_v12  ;;  %v1266_v59 = vmul.f32 0.26601171, %v2767_v36  ;;  %v2979_v18 = vmul.f32 0.10936069, %v2770_v41 }
 0x166   : > { %v2982_v4 = vmul.f32 0.21300554, %v2770_v41  ;;  %v772_v16 = vadd.f32 %v732_v13, %v672_v30  ;;  %v997_v0 = vrot.slane %v904_v37, 3  ;;  %v1561_v22 = vrot.slane %v904_v37, 7  ;;  %v2988_v12 = vpop.f32.mrb[19].mxu1 }
 0x167   : > { %v1178_v34 = vrot.slane %v1085_v3, 4  ;;  %v1460_v61 = vrot.slane %v1085_v3, 6  ;;  %v1224_v21 = vadd.f32 %v1150_v62, %v1043_v58  ;;  %v1359_v44 = vrot.slane %v1266_v59, 5  ;;  %3675 = vst [vmem:[#allocation26_spill] sm:$0xff] %v2988_v12 }
 0x168   : > { %v872_v31 = vadd.f32 %v832_v49, %v772_v16  ;;  %v999_v35 = vsel %vm960_vm1, %v997_v0, %v998_v29  ;;  %v1563_v13 = vsel %vm1524_vm5, %v1561_v22, %v1562_v23  ;;  %v971_v3 = vrot.slane %v2979_v18, 3 }
 0x169   : > { %v1180_v36 = vsel %vm1141_vm2, %v1178_v34, %v1179_v24  ;;  %v1462_v52 = vsel %vm1423_vm4, %v1460_v61, %v1461_v17  ;;  %v1405_v7 = vadd.f32 %v1331_v8, %v1224_v21  ;;  %v1361_v30 = vsel %vm1322_vm3, %v1359_v44, %v1360_v2 }
 0x16a   : > { %v1053_v6 = vadd.f32 %v999_v35, %v872_v31  ;;  %v1152_v62 = vrot.slane %v2982_v4, 4  ;;  %v1249_v49 = vmul.f32 0.26601171, %v2770_v41  ;;  %v1434_v29 = vrot.slane %v2982_v4, 6 }
 0x16b   : > { %v1506_v37 = vadd.f32 %v1432_v51, %v1405_v7  ;;  %v1535_v24 = vrot.slane %v2979_v18, 7  ;;  %v2998_v17 = vmul.f32 0.007598758, %v2770_v41  ;;  %v3001_v8 = vmul.f32 0.0010283801, %v2770_v41 }
 0x16c   : > { %v1234_v2 = vadd.f32 %v1180_v36, %v1053_v6  ;;  %v3004_v23 = vmul.f32 0.036000773, %v2770_v41  ;;  %v3007_v58 = vmul.f32 0.10936069, %v2772_v42  ;;  %v3010_v59 = vmul.f32 0.21300554, %v2772_v42 }
 0x16d   : > { %3676 = vst [vmem:[#allocation27_spill] sm:$0xff] %v2998_v17  ;;  %3677 = vst [vmem:[#allocation28_spill] sm:$0xff] %v3001_v8  ;;  %v3012_v4 = vadd.f32 %v1533_v11, %v1506_v37  ;;  %v1333_v7 = vrot.slane %v1249_v49, 5  ;;  %v1269_v18 = vmul.f32 0.26601171, %v2772_v42  ;;  %v3036_v37 = vadd.f32 %v2817_v1, %v2924_v63 }
 0x16e   : > { %v1415_v16 = vadd.f32 %v1361_v30, %v1234_v2  ;;  %v1001_v34 = vrot.slane %v3007_v58, 3  ;;  %v1182_v41 = vrot.slane %v3010_v59, 4  ;;  %v1464_v6 = vrot.slane %v3010_v59, 6 }
 0x16f   : > { %v1363_v61 = vrot.slane %v1269_v18, 5  ;;  %v1565_v21 = vrot.slane %v3007_v58, 7  ;;  %v3022_v11 = vmul.f32 0.007598758, %v2772_v42  ;;  %v3025_v22 = vmul.f32 0.036000773, %v2772_v42 }
 0x170   : > { %v1516_v44 = vadd.f32 %v1462_v52, %v1415_v16  ;;  %v3028_v31 = vmul.f32 0.0010283801, %v2772_v42  ;;  %v683_v35 = vmul.f32 0.007598758, %v2780_v53  ;;  %v663_v36 = vmul.f32 0.0010283801, %v2780_v53 }
 0x171   : > { %v783_v30 = vmul.f32 0.036000773, %v2780_v53  ;;  %v886_v49 = vmul.f32 0.10936069, %v2780_v53  ;;  %v1067_v59 = vmul.f32 0.21300554, %v2780_v53 }
 0x172   : > { %3678 = vst [vmem:[#allocation29_spill] sm:$0xff] %v3028_v31  ;;  %v1617_v2 = vadd.f32 %v1563_v13, %v1516_v44  ;;  %v723_v58 = vrot.slane %v683_v35, 1  ;;  %v1248_v16 = vmul.f32 0.26601171, %v2780_v53  ;;  %v673_v13 = vmul.f32 0.0010283801, %v2782_v55 }
 0x173   : > { %v823_v42 = vrot.slane %v783_v30, 2  ;;  %v970_v18 = vrot.slane %v886_v49, 3  ;;  %v1534_v0 = vrot.slane %v886_v49, 7  ;;  %v1151_v8 = vrot.slane %v1067_v59, 4 }
 0x174   : > { %v1657_v51 = vadd.f32 %v2940_v50, %v1617_v2  ;;  %v763_v39 = vadd.f32 %v723_v58, %v663_v36  ;;  %v1433_v17 = vrot.slane %v1067_v59, 6  ;;  %v1332_v1 = vrot.slane %v1248_v16, 5 }
 0x175   : > { %v972_v12 = vsel %vm960_vm1, %v970_v18, %v971_v3  ;;  %v1536_v63 = vsel %vm1524_vm5, %v1534_v0, %v1535_v24  ;;  %v3679_v44 = vrot.slane %v2943_v20, 1  ;;  %v1153_v53 = vsel %vm1141_vm2, %v1151_v8, %v1152_v62 }
 0x176   : > { %v863_v30 = vadd.f32 %v823_v42, %v763_v39  ;;  %v1435_v49 = vsel %vm1423_vm4, %v1433_v17, %v1434_v29  ;;  %v1334_v50 = vsel %vm1322_vm3, %v1332_v1, %v1333_v7  ;;  %v693_v36 = vmul.f32 0.007598758, %v2782_v55 }
 0x177   : > { %v3047_v35 = vadd.f32 %v3679_v44, %v1657_v51  ;;  %v793_v3 = vmul.f32 0.036000773, %v2782_v55  ;;  %v906_v2 = vmul.f32 0.10936069, %v2782_v55  ;;  %v1087_v0 = vmul.f32 0.21300554, %v2782_v55 }
 0x178   : > { %v1044_v24 = vadd.f32 %v972_v12, %v863_v30  ;;  %v1268_v20 = vmul.f32 0.26601171, %v2782_v55  ;;  %v3058_v51 = vmul.f32 0.10936069, %v2784_v9  ;;  %v733_v39 = vrot.slane %v693_v36, 1 }
 0x179   : > { %3680 = vst [vmem:[#allocation30_spill] sm:$0xff] %v3047_v35  ;;  %v833_v62 = vrot.slane %v793_v3, 2  ;;  %v1000_v8 = vrot.slane %v906_v2, 3  ;;  %v1564_v29 = vrot.slane %v906_v2, 7  ;;  %v1181_v7 = vrot.slane %v1087_v0, 4 }
 0x17a   : > { %v1225_v17 = vadd.f32 %v1153_v53, %v1044_v24  ;;  %v1362_v58 = vrot.slane %v1268_v20, 5  ;;  %v1463_v59 = vrot.slane %v1087_v0, 6  ;;  %v773_v18 = vadd.f32 %v733_v39, %v673_v13 }
 0x17b   : > { %v1002_v12 = vsel %vm960_vm1, %v1000_v8, %v1001_v34  ;;  %v1566_v16 = vsel %vm1524_vm5, %v1564_v29, %v1565_v21  ;;  %v1183_v55 = vsel %vm1141_vm2, %v1181_v7, %v1182_v41  ;;  %v974_v53 = vrot.slane %v3058_v51, 3 }
 0x17c   : > { %v1406_v1 = vadd.f32 %v1334_v50, %v1225_v17  ;;  %v1364_v44 = vsel %vm1322_vm3, %v1362_v58, %v1363_v61  ;;  %v1465_v30 = vsel %vm1423_vm4, %v1463_v59, %v1464_v6  ;;  %v873_v36 = vadd.f32 %v833_v62, %v773_v18 }
 0x17d   : > { %v1070_v3 = vmul.f32 0.21300554, %v2784_v9  ;;  %v1251_v2 = vmul.f32 0.26601171, %v2784_v9  ;;  %v1538_v13 = vrot.slane %v3058_v51, 7 }
 0x17e   : > { %v1507_v24 = vadd.f32 %v1435_v49, %v1406_v1  ;;  %v3071_v34 = vmul.f32 0.007598758, %v2784_v9  ;;  %v3074_v21 = vmul.f32 0.0010283801, %v2784_v9  ;;  %v1054_v41 = vadd.f32 %v1002_v12, %v873_v36 }
 0x17f   : > { %v1155_v61 = vrot.slane %v1070_v3, 4  ;;  %v1336_v50 = vrot.slane %v1251_v2, 5  ;;  %v3077_v6 = vmul.f32 0.036000773, %v2784_v9  ;;  %v1437_v0 = vrot.slane %v1070_v3, 6 }
 0x180   : > { %3681 = vst [vmem:[#allocation31_spill] sm:$0xff] %v3074_v21  ;;  %v3081_v39 = vmul.f32 0.10936069, %v2786_v10  ;;  %v1090_v49 = vmul.f32 0.21300554, %v2786_v10  ;;  %v1235_v51 = vadd.f32 %v1183_v55, %v1054_v41  ;;  %v3100_v2 = vadd.f32 %v1536_v63, %v1507_v24 }
 0x181   : > { %v1271_v8 = vmul.f32 0.26601171, %v2786_v10  ;;  %v3087_v29 = vmul.f32 0.007598758, %v2786_v10  ;;  %v3091_v58 = vmul.f32 0.036000773, %v2786_v10 }
 0x182   : > { %v1004_v17 = vrot.slane %v3081_v39, 3  ;;  %v1185_v9 = vrot.slane %v1090_v49, 4  ;;  %v1467_v7 = vrot.slane %v1090_v49, 6  ;;  %v1416_v59 = vadd.f32 %v1364_v44, %v1235_v51 }
 0x183   : > { %v1366_v18 = vrot.slane %v1271_v8, 5  ;;  %v1568_v12 = vrot.slane %v3081_v39, 7  ;;  %v3096_v55 = vmul.f32 0.0010283801, %v2786_v10  ;;  %v684_v36 = vmul.f32 0.007598758, %v2790_v14 }
 0x184   : > { %v784_v3 = vmul.f32 0.036000773, %v2790_v14  ;;  %v1517_v41 = vadd.f32 %v1465_v30, %v1416_v59  ;;  %v664_v49 = vmul.f32 0.0010283801, %v2790_v14  ;;  %v888_v42 = vmul.f32 0.10936069, %v2790_v14 }
 0x185   : > { %3682 = vst [vmem:[#allocation32_spill] sm:$0xff] %v3096_v55  ;;  %v1069_v44 = vmul.f32 0.21300554, %v2790_v14  ;;  %v724_v51 = vrot.slane %v684_v36, 1  ;;  %v1250_v8 = vmul.f32 0.26601171, %v2790_v14 }
 0x186   : > { %v824_v39 = vrot.slane %v784_v3, 2  ;;  %v674_v10 = vmul.f32 0.0010283801, %v2792_v15  ;;  %v1618_v62 = vadd.f32 %v1566_v16, %v1517_v41  ;;  %v973_v1 = vrot.slane %v888_v42, 3 }
 0x187   : > { %v1154_v20 = vrot.slane %v1069_v44, 4  ;;  %v1436_v52 = vrot.slane %v1069_v44, 6  ;;  %v764_v31 = vadd.f32 %v724_v51, %v664_v49  ;;  %v1335_v63 = vrot.slane %v1250_v8, 5 }
 0x188   : > { %v1537_v24 = vrot.slane %v888_v42, 7  ;;  %v694_v30 = vmul.f32 0.007598758, %v2792_v15  ;;  %v1658_v59 = vadd.f32 %v3025_v22, %v1618_v62  ;;  %v975_v35 = vsel %vm960_vm1, %v973_v1, %v974_v53 }
 0x189   : > { %v1156_v36 = vsel %vm1141_vm2, %v1154_v20, %v1155_v61  ;;  %v1438_v3 = vsel %vm1423_vm4, %v1436_v52, %v1437_v0  ;;  %v864_v14 = vadd.f32 %v824_v39, %v764_v31  ;;  %v1337_v21 = vsel %vm1322_vm3, %v1335_v63, %v1336_v50 }
 0x18a   : > { %v1539_v16 = vsel %vm1524_vm5, %v1537_v24, %v1538_v13  ;;  %v734_v41 = vrot.slane %v694_v30, 1  ;;  %v3683_v49 = vrot.slane %v3022_v11, 1  ;;  %v794_v42 = vmul.f32 0.036000773, %v2792_v15 }
 0x18b   : > { %v908_v22 = vmul.f32 0.10936069, %v2792_v15  ;;  %v1089_v53 = vmul.f32 0.21300554, %v2792_v15  ;;  %v1045_v62 = vadd.f32 %v975_v35, %v864_v14  ;;  %v1270_v52 = vmul.f32 0.26601171, %v2792_v15 }
 0x18c   : > { %v3116_v44 = vadd.f32 %v3683_v49, %v1658_v59  ;;  %v774_v61 = vadd.f32 %v734_v41, %v674_v10  ;;  %v3123_v31 = vmul.f32 0.10936069, %v2806_v26  ;;  %v834_v50 = vrot.slane %v794_v42, 2 }
 0x18d   : > { %v1003_v13 = vrot.slane %v908_v22, 3  ;;  %v1184_v0 = vrot.slane %v1089_v53, 4  ;;  %v1466_v20 = vrot.slane %v1089_v53, 6  ;;  %v1226_v1 = vadd.f32 %v1156_v36, %v1045_v62 }
 0x18e   : > { %3684 = vst [vmem:[#allocation33_spill] sm:$0xff] %v3116_v44  ;;  %v1365_v51 = vrot.slane %v1270_v52, 5  ;;  %v1567_v39 = vrot.slane %v908_v22, 7  ;;  %v874_v8 = vadd.f32 %v834_v50, %v774_v61  ;;  %v1072_v59 = vmul.f32 0.21300554, %v2806_v26 }
 0x18f   : > { %v1005_v63 = vsel %vm960_vm1, %v1003_v13, %v1004_v17  ;;  %v1186_v35 = vsel %vm1141_vm2, %v1184_v0, %v1185_v9  ;;  %v1468_v10 = vsel %vm1423_vm4, %v1466_v20, %v1467_v7  ;;  %v1407_v15 = vadd.f32 %v1337_v21, %v1226_v1 }
 0x190   : > { %v1367_v24 = vsel %vm1322_vm3, %v1365_v51, %v1366_v18  ;;  %v1569_v30 = vsel %vm1524_vm5, %v1567_v39, %v1568_v12  ;;  %v1055_v14 = vadd.f32 %v1005_v63, %v874_v8  ;;  %v977_v41 = vrot.slane %v3123_v31, 3 }
 0x191   : > { %v1253_v36 = vmul.f32 0.26601171, %v2806_v26  ;;  %v1541_v49 = vrot.slane %v3123_v31, 7  ;;  %v1508_v42 = vadd.f32 %v1438_v3, %v1407_v15  ;;  %v1158_v17 = vrot.slane %v1072_v59, 4 }
 0x192   : > { %v3136_v9 = vmul.f32 0.036000773, %v2806_v26  ;;  %v3139_v21 = vmul.f32 0.007598758, %v2806_v26  ;;  %v1236_v7 = vadd.f32 %v1186_v35, %v1055_v14  ;;  %v1440_v18 = vrot.slane %v1072_v59, 6 }
 0x193   : > { %v3142_v12 = vmul.f32 0.0010283801, %v2806_v26  ;;  %v911_v22 = vmul.f32 0.10936069, %v2808_v27  ;;  %v3145_v53 = vadd.f32 %v1539_v16, %v1508_v42  ;;  %v1339_v62 = vrot.slane %v1253_v36, 5 }
 0x194   : > { %v3148_v61 = vmul.f32 0.21300554, %v2808_v27  ;;  %v1273_v3 = vmul.f32 0.26601171, %v2808_v27  ;;  %v1417_v52 = vadd.f32 %v1367_v24, %v1236_v7  ;;  %v3156_v51 = vmul.f32 0.036000773, %v2808_v27 }
 0x195   : > { %v1007_v13 = vrot.slane %v911_v22, 3  ;;  %v1571_v1 = vrot.slane %v911_v22, 7  ;;  %v3159_v39 = vmul.f32 0.007598758, %v2808_v27  ;;  %v3162_v8 = vmul.f32 0.0010283801, %v2808_v27 }
 0x196   : > { %v1188_v0 = vrot.slane %v3148_v61, 4  ;;  %v1369_v26 = vrot.slane %v1273_v3, 5  ;;  %v1470_v20 = vrot.slane %v3148_v61, 6  ;;  %v1518_v16 = vadd.f32 %v1468_v10, %v1417_v52 }
 0x197   : > { %3685 = vst [vmem:[#allocation34_spill] sm:$0xff] %v3162_v8  ;;  %v685_v63 = vmul.f32 0.007598758, %v2822_v32  ;;  %v785_v35 = vmul.f32 0.036000773, %v2822_v32  ;;  %v3169_v24 = vadd.f32 %v2922_v45, %v3012_v4  ;;  %v3692_v8 = vld [vmem:[#allocation20_spill] sm:$0xff] }
 0x198   : > { %v890_v15 = vmul.f32 0.10936069, %v2822_v32  ;;  %v1619_v10 = vadd.f32 %v1569_v30, %v1518_v16  ;;  %v665_v14 = vmul.f32 0.0010283801, %v2822_v32  ;;  %v1071_v36 = vmul.f32 0.21300554, %v2822_v32 }
 0x199   : > { %v725_v42 = vrot.slane %v685_v63, 1  ;;  %v825_v27 = vrot.slane %v785_v35, 2  ;;  %v1252_v22 = vmul.f32 0.26601171, %v2822_v32  ;;  %v675_v16 = vmul.f32 0.0010283801, %v2824_v33 }
 0x19a   : > { %v976_v7 = vrot.slane %v890_v15, 3  ;;  %v3176_v61 = vadd.f32 %v3091_v58, %v1619_v10  ;;  %v1157_v3 = vrot.slane %v1071_v36, 4  ;;  %v1439_v52 = vrot.slane %v1071_v36, 6 }
 0x19b   : > { %v1540_v11 = vrot.slane %v890_v15, 7  ;;  %v765_v45 = vadd.f32 %v725_v42, %v665_v14  ;;  %v1338_v30 = vrot.slane %v1252_v22, 5  ;;  %v695_v32 = vmul.f32 0.007598758, %v2824_v33 }
 0x19c   : > { %v978_v4 = vsel %vm960_vm1, %v976_v7, %v977_v41  ;;  %v1159_v50 = vsel %vm1141_vm2, %v1157_v3, %v1158_v17  ;;  %v1441_v63 = vsel %vm1423_vm4, %v1439_v52, %v1440_v18  ;;  %v795_v10 = vmul.f32 0.036000773, %v2824_v33 }
 0x19d   : > { %v1542_v35 = vsel %vm1524_vm5, %v1540_v11, %v1541_v49  ;;  %v865_v59 = vadd.f32 %v825_v27, %v765_v45  ;;  %v1340_v58 = vsel %vm1322_vm3, %v1338_v30, %v1339_v62  ;;  %v910_v15 = vmul.f32 0.10936069, %v2824_v33 }
 0x19e   : > { %v735_v14 = vrot.slane %v695_v32, 1  ;;  %v1091_v41 = vmul.f32 0.21300554, %v2824_v33  ;;  %v1272_v36 = vmul.f32 0.26601171, %v2824_v33  ;;  %v3191_v17 = vadd.f32 %v3004_v23, %v3100_v2 }
 0x19f   : > { %v1046_v18 = vadd.f32 %v978_v4, %v865_v59  ;;  %v835_v11 = vrot.slane %v795_v10, 2  ;;  %v1006_v49 = vrot.slane %v910_v15, 3  ;;  %v1570_v42 = vrot.slane %v910_v15, 7 }
 0x1a0   : > { %v775_v27 = vadd.f32 %v735_v14, %v675_v16  ;;  %v1187_v7 = vrot.slane %v1091_v41, 4  ;;  %v1368_v62 = vrot.slane %v1272_v36, 5  ;;  %v1469_v22 = vrot.slane %v1091_v41, 6 }
 0x1a1   : > { %v1227_v3 = vadd.f32 %v1159_v50, %v1046_v18  ;;  %v1008_v52 = vsel %vm960_vm1, %v1006_v49, %v1007_v13  ;;  %v1572_v45 = vsel %vm1524_vm5, %v1570_v42, %v1571_v1  ;;  %v893_v30 = vmul.f32 0.10936069, %v2838_v46 }
 0x1a2   : > { %v875_v33 = vadd.f32 %v835_v11, %v775_v27  ;;  %v1189_v32 = vsel %vm1141_vm2, %v1187_v7, %v1188_v0  ;;  %v1370_v23 = vsel %vm1322_vm3, %v1368_v62, %v1369_v26  ;;  %v1471_v2 = vsel %vm1423_vm4, %v1469_v22, %v1470_v20 }
 0x1a3   : > { %v1408_v4 = vadd.f32 %v1340_v58, %v1227_v3  ;;  %v1074_v16 = vmul.f32 0.21300554, %v2838_v46  ;;  %v1255_v50 = vmul.f32 0.26601171, %v2838_v46  ;;  %v980_v13 = vrot.slane %v893_v30, 3 }
 0x1a4   : > { %v1056_v10 = vadd.f32 %v1008_v52, %v875_v33  ;;  %v1544_v15 = vrot.slane %v893_v30, 7  ;;  %v3203_v1 = vmul.f32 0.007598758, %v2838_v46  ;;  %v3206_v26 = vmul.f32 0.036000773, %v2838_v46 }
 0x1a5   : > { %v1509_v14 = vadd.f32 %v1441_v63, %v1408_v4  ;;  %v1161_v41 = vrot.slane %v1074_v16, 4  ;;  %v1342_v0 = vrot.slane %v1255_v50, 5  ;;  %v1443_v36 = vrot.slane %v1074_v16, 6 }
 0x1a6   : > { %v1237_v20 = vadd.f32 %v1189_v32, %v1056_v10  ;;  %v3209_v58 = vmul.f32 0.0010283801, %v2838_v46  ;;  %v3212_v18 = vmul.f32 0.10936069, %v2840_v47  ;;  %v1094_v42 = vmul.f32 0.21300554, %v2840_v47 }
 0x1a7   : > { %v3214_v11 = vadd.f32 %v1542_v35, %v1509_v14  ;;  %v1275_v63 = vmul.f32 0.26601171, %v2840_v47  ;;  %v3222_v22 = vmul.f32 0.036000773, %v2840_v47  ;;  %v3226_v35 = vmul.f32 0.007598758, %v2840_v47 }
 0x1a8   : > { %v1418_v27 = vadd.f32 %v1370_v23, %v1237_v20  ;;  %v1010_v62 = vrot.slane %v3212_v18, 3  ;;  %v1191_v46 = vrot.slane %v1094_v42, 4  ;;  %v1574_v52 = vrot.slane %v3212_v18, 7 }
 0x1a9   : > { %v1372_v3 = vrot.slane %v1275_v63, 5  ;;  %v1473_v33 = vrot.slane %v1094_v42, 6  ;;  %v3229_v32 = vmul.f32 0.0010283801, %v2840_v47  ;;  %v686_v23 = vmul.f32 0.007598758, %v2847_v57 }
 0x1aa   : > { %v1519_v30 = vadd.f32 %v1471_v2, %v1418_v27  ;;  %v666_v4 = vmul.f32 0.0010283801, %v2847_v57  ;;  %v786_v16 = vmul.f32 0.036000773, %v2847_v57  ;;  %v892_v50 = vmul.f32 0.10936069, %v2847_v57 }
 0x1ab   : > { %3686 = vst [vmem:[#allocation35_spill] sm:$0xff] %v3229_v32  ;;  %v3237_v10 = vadd.f32 %v3077_v6, %v3145_v53  ;;  %v726_v2 = vrot.slane %v686_v23, 1  ;;  %v1073_v18 = vmul.f32 0.21300554, %v2847_v57  ;;  %v1254_v63 = vmul.f32 0.26601171, %v2847_v57 }
 0x1ac   : > { %v1620_v14 = vadd.f32 %v1572_v45, %v1519_v30  ;;  %v826_v47 = vrot.slane %v786_v16, 2  ;;  %v979_v42 = vrot.slane %v892_v50, 3  ;;  %v1543_v27 = vrot.slane %v892_v50, 7 }
 0x1ad   : > { %v766_v7 = vadd.f32 %v726_v2, %v666_v4  ;;  %v1160_v49 = vrot.slane %v1073_v18, 4  ;;  %v1442_v31 = vrot.slane %v1073_v18, 6  ;;  %v1341_v53 = vrot.slane %v1254_v63, 5 }
 0x1ae   : > { %v3243_v59 = vadd.f32 %v3156_v51, %v1620_v14  ;;  %v981_v6 = vsel %vm960_vm1, %v979_v42, %v980_v13  ;;  %v1545_v45 = vsel %vm1524_vm5, %v1543_v27, %v1544_v15  ;;  %v676_v30 = vmul.f32 0.0010283801, %v2849_v38 }
 0x1af   : > { %v866_v23 = vadd.f32 %v826_v47, %v766_v7  ;;  %v1162_v16 = vsel %vm1141_vm2, %v1160_v49, %v1161_v41  ;;  %v1444_v20 = vsel %vm1423_vm4, %v1442_v31, %v1443_v36  ;;  %v696_v57 = vmul.f32 0.007598758, %v2849_v38 }
 0x1b0   : > { %v1343_v51 = vsel %vm1322_vm3, %v1341_v53, %v1342_v0  ;;  %v796_v4 = vmul.f32 0.036000773, %v2849_v38  ;;  %v912_v50 = vmul.f32 0.10936069, %v2849_v38  ;;  %v1093_v13 = vmul.f32 0.21300554, %v2849_v38 }
 0x1b1   : > { %v1047_v14 = vadd.f32 %v981_v6, %v866_v23  ;;  %v736_v2 = vrot.slane %v696_v57, 1  ;;  %v1274_v15 = vmul.f32 0.26601171, %v2849_v38  ;;  %v3257_v7 = vmul.f32 0.10936069, %v2866_v28 }
 0x1b2   : > { %v836_v41 = vrot.slane %v796_v4, 2  ;;  %v1009_v49 = vrot.slane %v912_v50, 3  ;;  %v1190_v31 = vrot.slane %v1093_v13, 4  ;;  %v1472_v36 = vrot.slane %v1093_v13, 6 }
 0x1b3   : > { %v1228_v18 = vadd.f32 %v1162_v16, %v1047_v14  ;;  %v776_v47 = vadd.f32 %v736_v2, %v676_v30  ;;  %v1371_v0 = vrot.slane %v1274_v15, 5  ;;  %v1573_v42 = vrot.slane %v912_v50, 7 }
 0x1b4   : > { %v1011_v27 = vsel %vm960_vm1, %v1009_v49, %v1010_v62  ;;  %v1192_v6 = vsel %vm1141_vm2, %v1190_v31, %v1191_v46  ;;  %v1474_v53 = vsel %vm1423_vm4, %v1472_v36, %v1473_v33  ;;  %v983_v13 = vrot.slane %v3257_v7, 3 }
 0x1b5   : > { %v1409_v38 = vadd.f32 %v1343_v51, %v1228_v18  ;;  %v876_v23 = vadd.f32 %v836_v41, %v776_v47  ;;  %v1373_v57 = vsel %vm1322_vm3, %v1371_v0, %v1372_v3  ;;  %v1575_v4 = vsel %vm1524_vm5, %v1573_v42, %v1574_v52 }
 0x1b6   : > { %v1076_v30 = vmul.f32 0.21300554, %v2866_v28  ;;  %v1257_v16 = vmul.f32 0.26601171, %v2866_v28  ;;  %v3270_v50 = vadd.f32 %v3136_v9, %v3214_v11  ;;  %v1547_v33 = vrot.slane %v3257_v7, 7 }
 0x1b7   : > { %v1510_v62 = vadd.f32 %v1444_v20, %v1409_v38  ;;  %v1057_v46 = vadd.f32 %v1011_v27, %v876_v23  ;;  %v3274_v51 = vmul.f32 0.007598758, %v2866_v28  ;;  %v3277_v52 = vmul.f32 0.036000773, %v2866_v28 }
 0x1b8   : > { %v1164_v3 = vrot.slane %v1076_v30, 4  ;;  %v1345_v14 = vrot.slane %v1257_v16, 5  ;;  %v3280_v2 = vmul.f32 0.0010283801, %v2866_v28  ;;  %v1446_v49 = vrot.slane %v1076_v30, 6 }
 0x1b9   : > { %v1611_v15 = vadd.f32 %v1545_v45, %v1510_v62  ;;  %v1238_v41 = vadd.f32 %v1192_v6, %v1057_v46  ;;  %v3283_v9 = vmul.f32 0.10936069, %v2874_v40  ;;  %v1096_v20 = vmul.f32 0.21300554, %v2874_v40 }
 0x1ba   : > { %v1277_v7 = vmul.f32 0.26601171, %v2874_v40  ;;  %v3687_v31 = vrot.slane %v2722_v48, 1  ;;  %v3297_v27 = vmul.f32 0.036000773, %v2874_v40 }
 0x1bb   : > { %v1419_v18 = vadd.f32 %v1373_v57, %v1238_v41  ;;  %v1013_v45 = vrot.slane %v3283_v9, 3  ;;  %v1577_v47 = vrot.slane %v3283_v9, 7  ;;  %v1194_v0 = vrot.slane %v1096_v20, 4 }
 0x1bc   : > { %v3291_v36 = vadd.f32 %v3687_v31, %v2959_v5  ;;  %v1375_v42 = vrot.slane %v1277_v7, 5  ;;  %v3300_v6 = vmul.f32 0.007598758, %v2874_v40  ;;  %v1476_v23 = vrot.slane %v1096_v20, 6 }
 0x1bd   : > { %v1520_v38 = vadd.f32 %v1474_v53, %v1419_v18  ;;  %v3303_v48 = vmul.f32 0.0010283801, %v2874_v40  ;;  %v687_v5 = vmul.f32 0.007598758, %v2876_v54  ;;  %v667_v57 = vmul.f32 0.0010283801, %v2876_v54 }
 0x1be   : > { %v787_v30 = vmul.f32 0.036000773, %v2876_v54  ;;  %v894_v16 = vmul.f32 0.10936069, %v2876_v54  ;;  %v3310_v62 = vadd.f32 %v3206_v26, %v1611_v15  ;;  %v1075_v9 = vmul.f32 0.21300554, %v2876_v54 }
 0x1bf   : > { %3688 = vst [vmem:[#allocation36_spill] sm:$0xff] %v3303_v48  ;;  %v3312_v46 = vadd.f32 %v1575_v4, %v1520_v38  ;;  %v727_v53 = vrot.slane %v687_v5, 1  ;;  %v1256_v7 = vmul.f32 0.26601171, %v2876_v54  ;;  %v677_v11 = vmul.f32 0.0010283801, %v2878_v56 }
 0x1c0   : > { %v827_v40 = vrot.slane %v787_v30, 2  ;;  %v982_v20 = vrot.slane %v894_v16, 3  ;;  %v1546_v31 = vrot.slane %v894_v16, 7  ;;  %v1163_v63 = vrot.slane %v1075_v9, 4 }
 0x1c1   : > { %v767_v18 = vadd.f32 %v727_v53, %v667_v57  ;;  %v1445_v28 = vrot.slane %v1075_v9, 6  ;;  %v1344_v15 = vrot.slane %v1256_v7, 5  ;;  %v697_v38 = vmul.f32 0.007598758, %v2878_v56 }
 0x1c2   : > { %v984_v26 = vsel %vm960_vm1, %v982_v20, %v983_v13  ;;  %v1548_v4 = vsel %vm1524_vm5, %v1546_v31, %v1547_v33  ;;  %v1165_v41 = vsel %vm1141_vm2, %v1163_v63, %v1164_v3  ;;  %v797_v54 = vmul.f32 0.036000773, %v2878_v56 }
 0x1c3   : > { %v867_v5 = vadd.f32 %v827_v40, %v767_v18  ;;  %v1447_v30 = vsel %vm1423_vm4, %v1445_v28, %v1446_v49  ;;  %v1346_v57 = vsel %vm1322_vm3, %v1344_v15, %v1345_v14  ;;  %v737_v16 = vrot.slane %v697_v38, 1 }
 0x1c4   : > { %v914_v53 = vmul.f32 0.10936069, %v2878_v56  ;;  %v1095_v9 = vmul.f32 0.21300554, %v2878_v56  ;;  %v837_v20 = vrot.slane %v797_v54, 2 }
 0x1c5   : > { %v1048_v13 = vadd.f32 %v984_v26, %v867_v5  ;;  %v1276_v33 = vmul.f32 0.26601171, %v2878_v56  ;;  %v3329_v7 = vmul.f32 0.10936069, %v2884_v19  ;;  %v777_v40 = vadd.f32 %v737_v16, %v677_v11 }
 0x1c6   : > { %v1012_v63 = vrot.slane %v914_v53, 3  ;;  %v1193_v3 = vrot.slane %v1095_v9, 4  ;;  %v1475_v49 = vrot.slane %v1095_v9, 6  ;;  %v1576_v18 = vrot.slane %v914_v53, 7 }
 0x1c7   : > { %v1229_v31 = vadd.f32 %v1165_v41, %v1048_v13  ;;  %v1374_v14 = vrot.slane %v1276_v33, 5  ;;  %v877_v15 = vadd.f32 %v837_v20, %v777_v40  ;;  %v1078_v16 = vmul.f32 0.21300554, %v2884_v19 }
 0x1c8   : > { %v1014_v38 = vsel %vm960_vm1, %v1012_v63, %v1013_v45  ;;  %v1195_v26 = vsel %vm1141_vm2, %v1193_v3, %v1194_v0  ;;  %v1477_v5 = vsel %vm1423_vm4, %v1475_v49, %v1476_v23  ;;  %v1578_v11 = vsel %vm1524_vm5, %v1576_v18, %v1577_v47 }
 0x1c9   : > { %v1410_v56 = vadd.f32 %v1346_v57, %v1229_v31  ;;  %v1376_v54 = vsel %vm1322_vm3, %v1374_v14, %v1375_v42  ;;  %v1058_v9 = vadd.f32 %v1014_v38, %v877_v15  ;;  %v986_v28 = vrot.slane %v3329_v7, 3 }
 0x1ca   : > { %v1259_v41 = vmul.f32 0.26601171, %v2884_v19  ;;  %v1550_v53 = vrot.slane %v3329_v7, 7  ;;  %v1167_v45 = vrot.slane %v1078_v16, 4  ;;  %v3342_v0 = vmul.f32 0.036000773, %v2884_v19 }
 0x1cb   : > { %v1511_v13 = vadd.f32 %v1447_v30, %v1410_v56  ;;  %v3345_v23 = vmul.f32 0.007598758, %v2884_v19  ;;  %v1239_v42 = vadd.f32 %v1195_v26, %v1058_v9  ;;  %v1449_v57 = vrot.slane %v1078_v16, 6 }
 0x1cc   : > { %v3348_v47 = vmul.f32 0.0010283801, %v2884_v19  ;;  %v917_v20 = vmul.f32 0.10936069, %v2886_v25  ;;  %v1348_v33 = vrot.slane %v1259_v41, 5 }
 0x1cd   : > { %v3352_v40 = vmul.f32 0.21300554, %v2886_v25  ;;  %v1279_v30 = vmul.f32 0.26601171, %v2886_v25  ;;  %v1612_v7 = vadd.f32 %v1548_v4, %v1511_v13  ;;  %v1420_v63 = vadd.f32 %v1376_v54, %v1239_v42  ;;  %v3691_v54 = vld [vmem:[#allocation19_spill] sm:$0xff] }
 0x1ce   : > { %3689 = vst [vmem:[#allocation37_spill] sm:$0xff] %v3348_v47  ;;  %v1016_v31 = vrot.slane %v917_v20, 3  ;;  %v1580_v15 = vrot.slane %v917_v20, 7  ;;  %v3360_v26 = vmul.f32 0.036000773, %v2886_v25 }
 0x1cf   : > { %v1197_v14 = vrot.slane %v3352_v40, 4  ;;  %v1378_v18 = vrot.slane %v1279_v30, 5  ;;  %v1479_v19 = vrot.slane %v3352_v40, 6  ;;  %v1521_v38 = vadd.f32 %v1477_v5, %v1420_v63 }
 0x1d0   : > { %v3363_v56 = vmul.f32 0.007598758, %v2886_v25  ;;  %v3366_v4 = vmul.f32 0.0010283801, %v2886_v25  ;;  %v688_v16 = vmul.f32 0.007598758, %v3691_v54  ;;  %v3372_v13 = vadd.f32 %v3277_v52, %v1612_v7 }
 0x1d1   : > { %v788_v9 = vmul.f32 0.036000773, %v3691_v54  ;;  %v896_v41 = vmul.f32 0.10936069, %v3691_v54  ;;  %v1622_v42 = vadd.f32 %v1578_v11, %v1521_v38  ;;  %v668_v20 = vmul.f32 0.0010283801, %v3691_v54 }
 0x1d2   : > { %3690 = vst [vmem:[#allocation38_spill] sm:$0xff] %v3366_v4  ;;  %v1077_v40 = vmul.f32 0.21300554, %v3691_v54  ;;  %v728_v30 = vrot.slane %v688_v16, 1  ;;  %v1258_v49 = vmul.f32 0.26601171, %v3691_v54 }
 0x1d3   : > { %v828_v63 = vrot.slane %v788_v9, 2  ;;  %v985_v25 = vrot.slane %v896_v41, 3  ;;  %v1549_v32 = vrot.slane %v896_v41, 7  ;;  %v678_v55 = vmul.f32 0.0010283801, %v3692_v8 }
 0x1d4   : > { %v1166_v3 = vrot.slane %v1077_v40, 4  ;;  %v1448_v48 = vrot.slane %v1077_v40, 6  ;;  %v768_v44 = vadd.f32 %v728_v30, %v668_v20  ;;  %v1347_v11 = vrot.slane %v1258_v49, 5 }
 0x1d5   : > { %v987_v52 = vsel %vm960_vm1, %v985_v25, %v986_v28  ;;  %v698_v7 = vmul.f32 0.007598758, %v3692_v8  ;;  %v1551_v16 = vsel %vm1524_vm5, %v1549_v32, %v1550_v53  ;;  %v798_v9 = vmul.f32 0.036000773, %v3692_v8 }
 0x1d6   : > { %v1168_v38 = vsel %vm1141_vm2, %v1166_v3, %v1167_v45  ;;  %v1450_v5 = vsel %vm1423_vm4, %v1448_v48, %v1449_v57  ;;  %v868_v54 = vadd.f32 %v828_v63, %v768_v44  ;;  %v1349_v40 = vsel %vm1322_vm3, %v1347_v11, %v1348_v33  ;;  %v3693_v33 = vld [vmem:[#allocation23_spill] sm:$0xff] }
 0x1d7   : > { %v738_v41 = vrot.slane %v698_v7, 1  ;;  %v916_v47 = vmul.f32 0.10936069, %v3692_v8  ;;  %v838_v20 = vrot.slane %v798_v9, 2  ;;  %v1097_v28 = vmul.f32 0.21300554, %v3692_v8 }
 0x1d8   : > { %v1278_v49 = vmul.f32 0.26601171, %v3692_v8  ;;  %v3391_v45 = vadd.f32 %v3222_v22, %v3312_v46  ;;  %v1049_v48 = vadd.f32 %v987_v52, %v868_v54  ;;  %v3394_v63 = vmul.f32 0.10936069, %v3693_v33 }
 0x1d9   : > { %v778_v57 = vadd.f32 %v738_v41, %v678_v55  ;;  %v1015_v32 = vrot.slane %v916_v47, 3  ;;  %v1579_v53 = vrot.slane %v916_v47, 7  ;;  %v1196_v3 = vrot.slane %v1097_v28, 4 }
 0x1da   : > { %v1377_v44 = vrot.slane %v1278_v49, 5  ;;  %v1478_v30 = vrot.slane %v1097_v28, 6  ;;  %v1230_v25 = vadd.f32 %v1168_v38, %v1049_v48  ;;  %v1080_v54 = vmul.f32 0.21300554, %v3693_v33 }
 0x1db   : > { %v878_v11 = vadd.f32 %v838_v20, %v778_v57  ;;  %v1017_v7 = vsel %vm960_vm1, %v1015_v32, %v1016_v31  ;;  %v1581_v8 = vsel %vm1524_vm5, %v1579_v53, %v1580_v15  ;;  %v1198_v22 = vsel %vm1141_vm2, %v1196_v3, %v1197_v14 }
 0x1dc   : > { %v1379_v55 = vsel %vm1322_vm3, %v1377_v44, %v1378_v18  ;;  %v1480_v46 = vsel %vm1423_vm4, %v1478_v30, %v1479_v19  ;;  %v1411_v47 = vadd.f32 %v1349_v40, %v1230_v25  ;;  %v1261_v41 = vmul.f32 0.26601171, %v3693_v33 }
 0x1dd   : > { %v1059_v52 = vadd.f32 %v1017_v7, %v878_v11  ;;  %v989_v38 = vrot.slane %v3394_v63, 3  ;;  %v1553_v31 = vrot.slane %v3394_v63, 7  ;;  %v3407_v15 = vmul.f32 0.007598758, %v3693_v33 }
 0x1de   : > { %v3410_v20 = vadd.f32 %v3297_v27, %v1622_v42  ;;  %v1512_v14 = vadd.f32 %v1450_v5, %v1411_v47  ;;  %v1170_v28 = vrot.slane %v1080_v54, 4  ;;  %v3413_v19 = vmul.f32 0.036000773, %v3693_v33 }
 0x1df   : > { %v1240_v18 = vadd.f32 %v1198_v22, %v1059_v52  ;;  %v1351_v40 = vrot.slane %v1261_v41, 5  ;;  %v1452_v49 = vrot.slane %v1080_v54, 6  ;;  %v3416_v48 = vmul.f32 0.0010283801, %v3693_v33 }
 0x1e0   : > { %v3419_v57 = vmul.f32 0.10936069, %v2964_v60  ;;  %v1613_v32 = vadd.f32 %v1551_v16, %v1512_v14  ;;  %v3422_v3 = vmul.f32 0.21300554, %v2964_v60  ;;  %v1281_v27 = vmul.f32 0.26601171, %v2964_v60 }
 0x1e1   : > { %3694 = vst [vmem:[#allocation19_spill] sm:$0xff] %v3416_v48  ;;  %v1421_v53 = vadd.f32 %v1379_v55, %v1240_v18  ;;  %v3432_v16 = vmul.f32 0.036000773, %v2964_v60  ;;  %v3436_v22 = vmul.f32 0.007598758, %v2964_v60  ;;  %v3696_v55 = vld [vmem:[#allocation14_spill] sm:$0xff] }
 0x1e2   : > { %v1019_v44 = vrot.slane %v3419_v57, 3  ;;  %v1583_v30 = vrot.slane %v3419_v57, 7  ;;  %v1653_v33 = vadd.f32 %v3342_v0, %v1613_v32  ;;  %v1200_v25 = vrot.slane %v3422_v3, 4 }
 0x1e3   : > { %v1522_v63 = vadd.f32 %v1480_v46, %v1421_v53  ;;  %3695 = vst [vmem:[#allocation20_spill] sm:$0xff] %v3432_v16  ;;  %v1381_v11 = vrot.slane %v1281_v27, 5  ;;  %v1482_v7 = vrot.slane %v3422_v3, 6  ;;  %v3697_v47 = vrot.slane %v3696_v55, 1  ;;  %v3700_v27 = vld [vmem:[#allocation26_spill] sm:$0xff] }
 0x1e4   : > { %v3698_v54 = vrot.slane %v3345_v23, 1  ;;  %v3448_v46 = vmul.f32 0.0010283801, %v2964_v60  ;;  %v689_v41 = vmul.f32 0.007598758, %v2970_v43 }
 0x1e5   : > { %v3441_v52 = vadd.f32 %v3697_v47, %v3036_v37  ;;  %v789_v14 = vmul.f32 0.036000773, %v2970_v43  ;;  %v669_v18 = vmul.f32 0.0010283801, %v2970_v43  ;;  %v898_v57 = vmul.f32 0.10936069, %v2970_v43 }
 0x1e6   : > { %v3445_v0 = vadd.f32 %v3698_v54, %v1653_v33  ;;  %3699 = vst [vmem:[#allocation23_spill] sm:$0xff] %v3448_v46  ;;  %v1079_v32 = vmul.f32 0.21300554, %v2970_v43  ;;  %v1623_v53 = vadd.f32 %v1581_v8, %v1522_v63  ;;  %v729_v37 = vrot.slane %v689_v41, 1 }
 0x1e7   : > { %v829_v3 = vrot.slane %v789_v14, 2  ;;  %v1260_v23 = vmul.f32 0.26601171, %v2970_v43  ;;  %v679_v33 = vmul.f32 0.0010283801, %v3700_v27  ;;  %v988_v55 = vrot.slane %v898_v57, 3 }
 0x1e8   : > { %v1169_v60 = vrot.slane %v1079_v32, 4  ;;  %v1451_v47 = vrot.slane %v1079_v32, 6  ;;  %v1552_v54 = vrot.slane %v898_v57, 7  ;;  %v769_v5 = vadd.f32 %v729_v37, %v669_v18 }
 0x1e9   : > { %v1350_v9 = vrot.slane %v1260_v23, 5  ;;  %v699_v42 = vmul.f32 0.007598758, %v3700_v27  ;;  %v799_v48 = vmul.f32 0.036000773, %v3700_v27  ;;  %v990_v46 = vsel %vm960_vm1, %v988_v55, %v989_v38 }
 0x1ea   : > { %v1171_v8 = vsel %vm1141_vm2, %v1169_v60, %v1170_v28  ;;  %v1453_v63 = vsel %vm1423_vm4, %v1451_v47, %v1452_v49  ;;  %v1554_v43 = vsel %vm1524_vm5, %v1552_v54, %v1553_v31  ;;  %v869_v41 = vadd.f32 %v829_v3, %v769_v5  ;;  %v3701_v28 = vld [vmem:[#allocation21_spill] sm:$0xff]  ;;  %v3703_v31 = vld [vmem:[#allocation27_spill] sm:$0xff] }
 0x1eb   : > { %v1352_v14 = vsel %vm1322_vm3, %v1350_v9, %v1351_v40  ;;  %v739_v16 = vrot.slane %v699_v42, 1  ;;  %v839_v32 = vrot.slane %v799_v48, 2  ;;  %v918_v18 = vmul.f32 0.10936069, %v3700_v27 }
 0x1ec   : > { %v1099_v57 = vmul.f32 0.21300554, %v3700_v27  ;;  %v1280_v37 = vmul.f32 0.26601171, %v3700_v27  ;;  %v1663_v23 = vadd.f32 %v3360_v26, %v1623_v53  ;;  %v1050_v38 = vadd.f32 %v990_v46, %v869_v41 }
 0x1ed   : > { %v779_v55 = vadd.f32 %v739_v16, %v679_v33  ;;  %v3702_v49 = vrot.slane %v3701_v28, 1  ;;  %v3704_v5 = vrot.slane %v3703_v31, 1  ;;  %v1018_v40 = vrot.slane %v918_v18, 3 }
 0x1ee   : > { %v1199_v48 = vrot.slane %v1099_v57, 4  ;;  %v1380_v42 = vrot.slane %v1280_v37, 5  ;;  %v1481_v3 = vrot.slane %v1099_v57, 6  ;;  %v1231_v47 = vadd.f32 %v1171_v8, %v1050_v38  ;;  %v3713_v37 = vld [vmem:[#allocation16_spill] sm:$0xff] }
 0x1ef   : > { %v1747_v60 = vadd.f32 %v3702_v49, %v3169_v24  ;;  %v1748_v9 = vadd.f32 %v3704_v5, %v3191_v17  ;;  %v879_v54 = vadd.f32 %v839_v32, %v779_v55  ;;  %v1582_v4 = vrot.slane %v918_v18, 7  ;;  %v3709_v18 = vld [vmem:[#allocation18_spill] sm:$0xff] }
 0x1f0   : > { %v3705_v26 = vrot.slane %v3071_v34, 1  ;;  %v1020_v16 = vsel %vm960_vm1, %v1018_v40, %v1019_v44  ;;  %v1201_v53 = vsel %vm1141_vm2, %v1199_v48, %v1200_v25  ;;  %v1382_v24 = vsel %vm1322_vm3, %v1380_v42, %v1381_v11  ;;  %v3710_v11 = vld [vmem:[#allocation12_spill] sm:$0xff] }
 0x1f1   : > { %v1483_v27 = vsel %vm1423_vm4, %v1481_v3, %v1482_v7  ;;  %v1412_v17 = vadd.f32 %v1352_v14, %v1231_v47  ;;  %v1060_v33 = vadd.f32 %v1020_v16, %v879_v54  ;;  %v1584_v41 = vsel %vm1524_vm5, %v1582_v4, %v1583_v30  ;;  %v3712_v14 = vld [vmem:[#allocation25_spill] sm:$0xff]  ;;  %v3724_v3 = vld [vmem:[#allocation22_spill] sm:$0xff]  ;;  %v3726_v47 = vld [vmem:[#allocation28_spill] sm:$0xff] }
 0x1f2   : > { %v1749_v46 = vadd.f32 %v3705_v26, %v3237_v10  ;;  %v3706_v8 = vrot.slane %v3139_v21, 1  ;;  %v3707_v34 = vrot.slane %v3203_v1, 1  ;;  %v3708_v44 = vrot.slane %v3274_v51, 1 }
 0x1f3   : > { %v3711_v57 = vrot.slane %v3710_v11, 1  ;;  %v3714_v38 = vrot.slane %v3713_v37, 1  ;;  %v1513_v30 = vadd.f32 %v1453_v63, %v1412_v17  ;;  %v1241_v55 = vadd.f32 %v1201_v53, %v1060_v33  ;;  %v3743_v11 = vld [vmem:[#allocation33_spill] sm:$0xff]  ;;  %v3746_v37 = vld [vmem:[#allocation32_spill] sm:$0xff] }
 0x1f4   : > { %v1750_v32 = vadd.f32 %v3706_v8, %v3270_v50  ;;  %v1751_v10 = vadd.f32 %v3707_v34, %v3310_v62  ;;  %v1752_v25 = vadd.f32 %v3708_v44, %v3372_v13  ;;  %v3715_v21 = vrot.slane %v3087_v29, 1 }
 0x1f5   : > { %v1755_v7 = vadd.f32 %v3711_v57, %v3709_v18  ;;  %v1756_v4 = vadd.f32 %v3714_v38, %v3712_v14  ;;  %v3716_v1 = vrot.slane %v3159_v39, 1  ;;  %v1724_v51 = vrot.slane %v3436_v22, 1 }
 0x1f6   : > { %v1759_v50 = vadd.f32 %v3715_v21, %v3176_v61  ;;  %v3717_v13 = vrot.slane %v3226_v35, 1  ;;  %v3718_v49 = vrot.slane %v3300_v6, 1  ;;  %v3719_v63 = vrot.slane %v3363_v56, 1  ;;  %v3720_v61 = vld [vmem:[#allocation11_spill] sm:$0xff] }
 0x1f7   : > { %v1760_v62 = vadd.f32 %v3716_v1, %v3243_v59  ;;  %v1614_v40 = vadd.f32 %v1554_v43, %v1513_v30  ;;  %v1422_v29 = vadd.f32 %v1382_v24, %v1241_v55  ;;  %v3721_v48 = vrot.slane %v3720_v61, 2  ;;  %v3722_v59 = vld [vmem:[#allocation15_spill] sm:$0xff]  ;;  %v3748_v30 = vld [vmem:[#allocation34_spill] sm:$0xff] }
 0x1f8   : > { %v1761_v28 = vadd.f32 %v3717_v13, %v3391_v45  ;;  %v1762_v31 = vadd.f32 %v3718_v49, %v3410_v20  ;;  %v1763_v5 = vadd.f32 %v3719_v63, %v1663_v23  ;;  %v3723_v22 = vrot.slane %v3722_v59, 2  ;;  %v3728_v20 = vld [vmem:[#allocation31_spill] sm:$0xff]  ;;  %v3752_v49 = vld [vmem:[#allocation36_spill] sm:$0xff] }
 0x1f9   : > { %v1845_v39 = vadd.f32 %v3721_v48, %v3291_v36  ;;  %v3725_v35 = vrot.slane %v3724_v3, 2  ;;  %v3727_v54 = vrot.slane %v3726_v47, 2  ;;  %v3729_v26 = vrot.slane %v3728_v20, 2  ;;  %v3750_v21 = vld [vmem:[#allocation35_spill] sm:$0xff] }
 0x1fa   : > { %v1846_v42 = vadd.f32 %v3723_v22, %v3441_v52  ;;  %v3730_v43 = vrot.slane %v3142_v12, 2  ;;  %v1654_v16 = vadd.f32 %v3413_v19, %v1614_v40  ;;  %v1523_v53 = vadd.f32 %v1483_v27, %v1422_v29  ;;  %v3737_v12 = vld [vmem:[#allocation17_spill] sm:$0xff]  ;;  %v3739_v19 = vld [vmem:[#allocation30_spill] sm:$0xff]  ;;  %v3740_v27 = vld [vmem:[#allocation24_spill] sm:$0xff] }
 0x1fb   : > { %v1847_v45 = vadd.f32 %v3725_v35, %v1747_v60  ;;  %v1848_v6 = vadd.f32 %v3727_v54, %v1748_v9  ;;  %v1849_v56 = vadd.f32 %v3729_v26, %v1749_v46  ;;  %v3731_v36 = vrot.slane %v3209_v58, 2  ;;  %v3733_v60 = vld [vmem:[#allocation37_spill] sm:$0xff]  ;;  %v3754_v29 = vld [vmem:[#allocation38_spill] sm:$0xff]  ;;  %v3757_v59 = vld [vmem:[#allocation23_spill] sm:$0xff] }
 0x1fc   : > { %v1850_v23 = vadd.f32 %v3730_v43, %v1750_v32  ;;  %v3732_v52 = vrot.slane %v3280_v2, 2  ;;  %v3734_v33 = vrot.slane %v3733_v60, 2  ;;  %v3735_v9 = vld [vmem:[#allocation13_spill] sm:$0xff]  ;;  %v3738_v32 = vrot.slane %v3737_v12, 2  ;;  %v3758_v3 = vld [vmem:[#allocation19_spill] sm:$0xff] }
 0x1fd   : > { %v1851_v24 = vadd.f32 %v3731_v36, %v1751_v10  ;;  %v3736_v34 = vrot.slane %v3735_v9, 2  ;;  %v3741_v58 = vrot.slane %v3740_v27, 2  ;;  %v3742_v2 = vrot.slane %v3407_v15, 1 }
 0x1fe   : > { %v1852_v17 = vadd.f32 %v3732_v52, %v1752_v25  ;;  %v3534_v8 = vadd.f32 %v3734_v33, %v3445_v0  ;;  %v3542_v44 = vadd.f32 %v3738_v32, %v1756_v4  ;;  %v1624_v18 = vadd.f32 %v1584_v41, %v1523_v53  ;;  %v3744_v0 = vld [vmem:[#allocation29_spill] sm:$0xff]  ;;  %v3756_v41 = vld [vmem:[#allocation20_spill] sm:$0xff] }
 0x1ff   : > { %v3538_v46 = vadd.f32 %v3736_v34, %v1755_v7  ;;  %v3547_v10 = vadd.f32 %v3741_v58, %v3739_v19  ;;  %v1754_v25 = vadd.f32 %v3742_v2, %v1654_v16  ;;  %v3745_v57 = vrot.slane %v3744_v0, 2 }
 0x200   : > { %v3747_v7 = vrot.slane %v3746_v37, 2  ;;  %v3749_v55 = vrot.slane %v3748_v30, 2  ;;  %v3751_v1 = vrot.slane %v3750_v21, 2  ;;  %v3753_v63 = vrot.slane %v3752_v49, 2 }
 0x201   : > { %v1858_v14 = vadd.f32 %v3745_v57, %v3743_v11  ;;  %v3755_v15 = vrot.slane %v3754_v29, 2  ;;  %v1664_v48 = vadd.f32 %v3756_v41, %v1624_v18  ;;  %v1824_v22 = vrot.slane %v3757_v59, 2 }
 0x202   : > { %v1859_v38 = vadd.f32 %v3747_v7, %v1759_v50  ;;  %v1860_v4 = vadd.f32 %v3749_v55, %v1760_v62  ;;  %v1861_v13 = vadd.f32 %v3751_v1, %v1761_v28  ;;  %v1862_v40 = vadd.f32 %v3753_v63, %v1762_v31 }
 0x203   : > { %v1863_v61 = vadd.f32 %v3755_v15, %v1763_v5  ;;  %v3759_v35 = vrot.slane %v3758_v3, 2  ;;  %v1865_v50 = vmul.f32 %v1845_v39, %v1845_v39  ;;  %v1866_v54 = vmul.f32 %v1846_v42, %v1846_v42 }
 0x204   : > { %v1867_v20 = vmul.f32 %v1847_v45, %v1847_v45  ;;  %v1869_v62 = vmul.f32 %v1849_v56, %v1849_v56  ;;  %v1870_v26 = vmul.f32 %v1850_v23, %v1850_v23  ;;  %v1764_v43 = vadd.f32 %v1724_v51, %v1664_v48 }
 0x205   : > { %v1854_v47 = vadd.f32 %v3759_v35, %v1754_v25  ;;  %v1871_v28 = vmul.f32 %v1851_v24, %v1851_v24  ;;  %v1872_v16 = vmul.f32 %v1852_v17, %v1852_v17  ;;  %v1873_v53 = vmul.f32 %v1849_v56, %v1845_v39 }
 0x206   : > { %v1874_v31 = vmul.f32 %v1850_v23, %v1846_v42  ;;  %v1875_v36 = vmul.f32 %v1851_v24, %v1847_v45  ;;  %v1876_v52 = vmul.f32 %v1852_v17, %v1848_v6  ;;  %v1901_v5 = vadd.f32 %v1869_v62, %v1865_v50 }
 0x207   : > { %v1864_v60 = vadd.f32 %v1824_v22, %v1764_v43  ;;  %v1877_v33 = vmul.f32 2.0, %v1873_v53  ;;  %v1885_v9 = vsub.f32 %v1861_v13, %v1873_v53  ;;  %v1902_v34 = vadd.f32 %v1870_v26, %v1866_v54 }
 0x208   : > { %v1878_v12 = vmul.f32 2.0, %v1874_v31  ;;  %v1879_v32 = vmul.f32 2.0, %v1875_v36  ;;  %v1880_v19 = vmul.f32 2.0, %v1876_v52  ;;  %v1886_v27 = vsub.f32 %v1862_v40, %v1874_v31 }
 0x209   : > { %v1887_v58 = vsub.f32 %v1863_v61, %v1875_v36  ;;  %v1888_v2 = vsub.f32 %v1864_v60, %v1876_v52  ;;  %v1889_v25 = vmul.f32 2.0, %v1885_v9  ;;  %v1868_v18 = vmul.f32 %v1848_v6, %v1848_v6 }
 0x20a   : > { %v1881_v51 = vadd.f32 0.0001, %v1877_v33  ;;  %v1903_v11 = vadd.f32 %v1871_v28, %v1867_v20  ;;  %v1890_v0 = vmul.f32 2.0, %v1886_v27  ;;  %v1882_v56 = vadd.f32 0.0001, %v1878_v12 }
 0x20b   : > { %v1891_v39 = vmul.f32 2.0, %v1887_v58  ;;  %v1892_v42 = vmul.f32 2.0, %v1888_v2  ;;  %v1893_v45 = vadd.f32 0.0009, %v1889_v25  ;;  %v1883_v23 = vadd.f32 0.0001, %v1879_v32 }
 0x20c   : > { %v1884_v24 = vadd.f32 0.0001, %v1880_v19  ;;  %v1904_v17 = vadd.f32 %v1872_v16, %v1868_v18  ;;  %v1894_v57 = vadd.f32 0.0009, %v1890_v0  ;;  %v1909_v55 = vsub.f32 %v3534_v8, %v1865_v50 }
 0x20d   : > { %v1895_v37 = vadd.f32 0.0009, %v1891_v39  ;;  %v1896_v7 = vadd.f32 0.0009, %v1892_v42  ;;  %v1897_v30 = vmul.f32 %v1893_v45, %v1881_v51  ;;  %v1910_v21 = vsub.f32 %v1854_v47, %v1866_v54 }
 0x20e   : > { %v1911_v1 = vsub.f32 %v3538_v46, %v1867_v20  ;;  %v1898_v6 = vmul.f32 %v1894_v57, %v1882_v56  ;;  %v1912_v63 = vsub.f32 %v3542_v44, %v1868_v18  ;;  %v1913_v40 = vsub.f32 %v3547_v10, %v1869_v62 }
 0x20f   : > { %v1899_v13 = vmul.f32 %v1895_v37, %v1883_v23  ;;  %v1900_v49 = vmul.f32 %v1896_v7, %v1884_v24  ;;  %v1914_v29 = vsub.f32 %v1858_v14, %v1870_v26  ;;  %v1915_v15 = vsub.f32 %v1859_v38, %v1871_v28 }
 0x210   : > { %v1916_v61 = vsub.f32 %v1860_v4, %v1872_v16  ;;  %v1917_v41 = vadd.f32 %v1913_v40, %v1909_v55  ;;  %v1905_v3 = vadd.f32 0.0001, %v1901_v5  ;;  %v1906_v35 = vadd.f32 0.0001, %v1902_v34 }
 0x211   : > { %v1918_v48 = vadd.f32 %v1914_v29, %v1910_v21  ;;  %v1919_v59 = vadd.f32 %v1915_v15, %v1911_v1  ;;  %v1907_v8 = vadd.f32 0.0001, %v1903_v11  ;;  %v1908_v54 = vadd.f32 0.0001, %v1904_v17 }
 0x212   : > { %v1920_v22 = vadd.f32 %v1916_v61, %v1912_v63  ;;  %v1921_v47 = vadd.f32 0.0009, %v1917_v41 }
 0x213   : > { %v1922_v50 = vadd.f32 0.0009, %v1918_v48  ;;  %v1923_v46 = vadd.f32 0.0009, %v1919_v59 }
 0x214   : > { %v1924_v20 = vadd.f32 0.0009, %v1920_v22  ;;  %v1925_v43 = vmul.f32 %v1921_v47, %v1905_v3 }
 0x215   : > { %v1926_v53 = vmul.f32 %v1922_v50, %v1906_v35  ;;  %v1927_v44 = vmul.f32 %v1923_v46, %v1907_v8 }
 0x216   : > { %v1928_v31 = vmul.f32 %v1924_v20, %v1908_v54  ;;  %2286 = vrcp.f32 %v1925_v43 }
 0x217   : > { %2288 = vrcp.f32 %v1926_v53 }
 0x218   : > { %2290 = vrcp.f32 %v1927_v44 }
 0x219   : > { %2292 = vrcp.f32 %v1928_v31 }
 0x220   : > { %v2287_v10 = vpop.eup %2286 }
 0x221   : > { %v2289_v14 = vpop.eup %2288  ;;  %v1933_v38 = vmul.f32 %v2287_v10, %v1897_v30 }
 0x222   : > { %v2291_v4 = vpop.eup %2290  ;;  %v1934_v62 = vmul.f32 %v2289_v14, %v1898_v6 }
 0x223   : > { %v2293_v26 = vpop.eup %2292  ;;  %v1935_v28 = vmul.f32 %v2291_v4, %v1899_v13  ;;  %v1938_v36 = vsel %vm1937_vm6, %v1933_v38, 0.0 }
 0x224   : > { %v1936_v16 = vmul.f32 %v2293_v26, %v1900_v49  ;;  %v1939_v52 = vsel %vm1937_vm6, %v1934_v62, 0.0 }
 0x225   : > { %v1940_v5 = vadd.f32 %v1939_v52, %v1938_v36  ;;  %v1941_v60 = vsel %vm1937_vm6, %v1935_v28, 0.0 }
 0x226   : > { %v1943_v9 = vsel %vm1937_vm6, %v1936_v16, 0.0 }
 0x227   : > { %v1942_v33 = vadd.f32 %v1941_v60, %v1940_v5 }
 0x229   : > { %v1944_v34 = vadd.f32 %v1943_v9, %v1942_v33 }
 0x22b   : > { %1945 = vadd.xlane.f32.xlu0 %v1944_v34 }
 0x2b8   : > { %v1946_v12 = vpop.xlane.xlu0 %1945 }
 0x2b9   : > { %v1947_v32 = vrot.slane %v1946_v12, 4 }
 0x2bb   : > { %v1948_v19 = vadd.f32 %v1947_v32, %v1946_v12 }
 0x2bd   : > { %v1949_v27 = vrot.slane %v1948_v19, 2 }
 0x2bf   : > { %v1950_v58 = vadd.f32 %v1949_v27, %v1948_v19 }
 0x2c1   : > { %v1951_v2 = vrot.slane %v1950_v58, 1 }
 0x2c3   : > { %v1952_v25 = vadd.f32 %v1951_v2, %v1950_v58 }
 0x2c5   : > { %2231 = vpush %v1952_v25 }
 0x2f6   : > { %s2232_s17 = spop %2231 }
 0x2f7   : > { %v1954_v18 = vstv %s2232_s17 }
 0x2f8   : > { %1955 = vst [vmem:[%s229_s23] sm:$0x1] %v1954_v18 }
 0x2f9   : > { %2367 = shalt.err (!%p2364_p11)
}
 0x2fa   : > { %s2368_s6 = scalar_lea.hbm %s3579_s22, 16  ;;  %s2372_s10 = scalar_lea.hbm %s3624_s3, 32 }
 0x2fb   : > { %p2369_p3 = scmp.ne.s32.totalorder %s3579_s22, %s2368_s6  ;;  %p2373_p2 = scmp.lt.u32.totalorder %s3579_s22, %s3624_s3 }
 0x2fc   : > { %p2374_p4 = scmp.lt.u32.totalorder %s2372_s10, %s2368_s6  ;;  %p2376_p13 = scmp.lt.u32.totalorder %s2368_s6, %s3579_s22 }
 0x2fd   : > { %p2370_p8 = pnand %p2369_p3, %p3760_p1 }
 0x2fe   : > { %p2375_p6 = por %p2374_p4, %p2373_p2 }
 0x2ff   : > { %p2371_p0 = pneg %p2370_p8 }
 0x300   : > { %p2377_p12 = por %p2376_p13, %p2375_p6 }
 0x302   : > { %p2378_p10 = pnand %p2377_p12, %p2371_p0 }
 0x304   : > { %2381 = shalt.err (!%p2378_p10)
}
 0x305   : > { %2237 = dma.vmem_to_hbm [thread:$0]  (%p3760_p1), %s3574_s4, 16, %s3579_s22, %s1957_s8  }
 0x306 PF: > { %s1981_s29 = sand.u32 1, %s2412_s12   ;;  %p3761_p5 = scmp.ne.s32.totalorder %s3655_s25, 0 }
 0x307   : > { %p3762_p7 = scmp.ge.s32.totalorder %s2424_s15, 2  ;;  %s1982_s23 = scalar_lea.sflag [#allocation4], %s1981_s29 }
 0x309   : > { %p2247_p9 = pnand %p3762_p7, %p3761_p5 }
 0x30b   : > { %2407 = dma.done.wait (!%p2247_p9), %s1982_s23, 16  }
 0x30c   : > { %2409 = vsyncadd (!%p2247_p9), %s1982_s23, 4294967280  ;;  %p19_p11 = scmp.ge.s32.totalorder %s2476_s18, 4   ;;  %s3763_s12 = smov %s2416_s13 }
 0x30d   : > { %s3764_s13 = smov %s2420_s14  ;;  %s3765_s14 = smov %s2488_s21 }
 0x30e   : > { %s3766_s15 = smov %s2476_s18  ;;  %21 = sbr.rel (!%p19_p11) target bundleno = 7 (0x7), region = 90 }
 0x315   :  { %1986 = vsyncpa [#allocation3], 1 }
 0x316   :  { %1988 = vsyncpa [#allocation3 + $0x1], 1 }
 0x317   :  { %1989 = vsyncpa [#allocation6], 1 }
 0x318   :  { %1991 = vsyncpa [#allocation6 + $0x1], 1 }
 0x319   :  { %1992 = vsyncpa [#allocation4], 1 }
 0x31a   :  { %1994 = vsyncpa [#allocation4 + $0x1], 1 }

</bundles_post_ra>
